<compile_context>
chip_gen: v7x
topology: tpu7x:2x2x1
jax: 0.10.0
libtpu: 0.0.40
codegen_flags: <defaults>
</compile_context>

<pallas_src>
import jax
import jax.numpy as jnp
from jax.experimental import pallas as pl
from jax.experimental.pallas import tpu as pltpu


# --------------------------------------------------------------------------
# Pallas kernel: channel mix (coarse grid) + fused Kronecker grid projection.
# --------------------------------------------------------------------------
def _project_kernel(v_ref, wmix_ref, khw_ref, bias_ref, out_ref):
    """One grid step: project a block of batch elements onto the refined grid.

    v_ref    : [Bblk, C, P]    P = H*W      (natural order, lane-dense, v dtype)
    wmix_ref : [Co, C]                      (f32, resident)
    khw_ref  : [P, Q]          Q = Ho*Wo    (f32, resident, Kh^T (x) Kw^T)
    bias_ref : [Co, 1]                      (f32)
    out_ref  : [Bblk, Co, Q]                (v dtype, lane-dense stores)
    """
    bblk = v_ref.shape[0]
    # Static unroll over the batch block: no in-kernel transposes / relayouts at all.
    for b in range(bblk):
        # 1) channel mix FIRST on the coarse grid (scale**2 fewer mix FLOPs):
        #    [Co, C] x [C, P] -> [Co, P], lhs-minor contraction, 256-lane rhs/out.
        m = jnp.dot(wmix_ref[...], v_ref[b], preferred_element_type=jnp.float32)
        # 2) fused spatial refinement: [Co, P] x [P, Q] -> [Co, Q]; 256-deep
        #    contraction, 1024-lane output, f32 chain kept end-to-end.
        r = jnp.dot(m, khw_ref[...], preferred_element_type=jnp.float32)
        # 3) bias epilogue fused into the (unmasked, lane-dense) store.
        out_ref[b] = (r + bias_ref[...]).astype(out_ref.dtype)


# --------------------------------------------------------------------------
# VMEM accounting / block selection (static, shape-only).
# --------------------------------------------------------------------------
def _kernel_vmem_bytes(bblk, C, P, Co, Q, act_itemsize):
    in_blk = bblk * C * P * act_itemsize
    out_blk = bblk * Co * Q * act_itemsize
    weights = (Co * C + P * Q + Co) * 4          # f32 weights (counted, budgeted at 2x)
    interm = 4 * bblk * Co * (P + Q)             # f32 intermediates, NOT double-buffered
    return 2 * (in_blk + out_blk) + 2 * weights + interm


def _vmem_budget_bytes():
    """Generation-aware working-set budget (v7x has 64 MiB VMEM per TC, v5e/v6e 128)."""
    kind = ""
    try:
        kind = jax.devices()[0].device_kind.lower()
    except Exception:
        pass
    if "v7" in kind or "7x" in kind:
        return 40 * 2**20
    return 80 * 2**20


def _pick_batch_block(B, C, P, Co, Q, act_itemsize, budget):
    """Largest batch block dividing B that fits the VMEM budget (single-TC chips want
    the biggest block; no forced >=2 grid steps).  Fails loudly instead of silently
    returning a block that blows the limit."""
    best = None
    for cand in range(1, B + 1):
        if B % cand:
            continue
        if _kernel_vmem_bytes(cand, C, P, Co, Q, act_itemsize) <= budget:
            best = cand
    if best is None:
        # TODO(synk): tile over Co and/or the refined grid Q instead of failing.
        raise ValueError("LinearProjectToNewGrid2d pallas kernel: a single-batch block "
                         "does not fit the VMEM budget; add channel/spatial tiling.")
    return best


# --------------------------------------------------------------------------
# Wrapper
# --------------------------------------------------------------------------
@jax.jit
def linear_project_to_new_grid_2d(v, kh, kw, wmix, bias):
    """v: [B, C, H, W]  ->  out: [B, Co, Ho, Wo]  (forward of LinearProjectToNewGrid2d)."""
    B, C, H, W = v.shape
    Ho = kh.shape[0]
    Wo = kw.shape[0]
    Co = wmix.shape[0]
    P, Q = H * W, Ho * Wo
    act_itemsize = v.dtype.itemsize

    budget = _vmem_budget_bytes()
    if P * Q * 4 > budget // 4:
        # TODO(synk): separable two-matmul path for grids where Khw does not fit VMEM.
        raise NotImplementedError("fused Kronecker kernel Khw too large for VMEM; "
                                  "separable path not implemented")

    # Wrapper-side weight prep (all cheap, weight-sized): fused Kronecker resampling
    # kernel in f32, f32 mix matrix / bias column.  Activation layout is just a free
    # contiguous reshape -- no HBM transpose of v.
    khw = jnp.kron(kh.astype(jnp.float32).T, kw.astype(jnp.float32).T)   # [P, Q]
    wmix_f = wmix.astype(jnp.float32)                                    # [Co, C]
    bias2 = bias.astype(jnp.float32).reshape(Co, 1)                      # [Co, 1]
    v_flat = v.reshape(B, C, P)                                          # [B, C, P]

    bblk = _pick_batch_block(B, C, P, Co, Q, act_itemsize, budget)
    grid = (B // bblk,)

    need = _kernel_vmem_bytes(bblk, C, P, Co, Q, act_itemsize)
    vmem_limit = int(min(budget, max(32 * 2**20, 2 * need)))

    flops = 2 * B * Co * C * P + 2 * B * Co * P * Q + B * Co * Q
    bytes_accessed = (B * C * P * act_itemsize + B * Co * Q * act_itemsize
                      + (Co * C + P * Q + Co) * 4)

    out = pl.pallas_call(
        _project_kernel,
        out_shape=jax.ShapeDtypeStruct((B, Co, Q), v.dtype),
        grid=grid,
        in_specs=[
            pl.BlockSpec((bblk, C, P), lambda b: (b, 0, 0)),
            # Constant-index weight operands: resident across the grid, single-buffered.
            pl.BlockSpec((Co, C), lambda b: (0, 0), pipeline_mode=pl.Buffered(1)),
            pl.BlockSpec((P, Q), lambda b: (0, 0), pipeline_mode=pl.Buffered(1)),
            pl.BlockSpec((Co, 1), lambda b: (0, 0), pipeline_mode=pl.Buffered(1)),
        ],
        out_specs=pl.BlockSpec((bblk, Co, Q), lambda b: (b, 0, 0)),
        compiler_params=pltpu.CompilerParams(
            dimension_semantics=("parallel",),
            vmem_limit_bytes=vmem_limit,
        ),
        cost_estimate=pl.CostEstimate(
            flops=flops, transcendentals=0, bytes_accessed=bytes_accessed),
    )(v_flat, wmix_f, khw, bias2)

    return out.reshape(B, Co, Ho, Wo)


# --------------------------------------------------------------------------
# Deterministic parameter construction ("random project" weights).
# --------------------------------------------------------------------------
def _make_axis_projector(key, n_in, n_out, n_modes):
    """Low-rank kernel K [n_out, n_in] from random Fourier features of 1-D coords."""
    k_omega, k_phase, k_mix = jax.random.split(key, 3)
    omega = jax.random.normal(k_omega, (n_modes,), dtype=jnp.float32)
    phase = jax.random.uniform(k_phase, (n_modes,), minval=0.0, maxval=2.0 * jnp.pi,
                               dtype=jnp.float32)
    x_in = (jnp.arange(n_in, dtype=jnp.float32) + 0.5) / n_in
    x_out = (jnp.arange(n_out, dtype=jnp.float32) + 0.5) / n_out
    scale = jnp.sqrt(2.0 / n_modes)
    phi_in = scale * jnp.cos(2.0 * jnp.pi * omega[None, :] * x_in[:, None] + phase[None, :])
    phi_out = scale * jnp.cos(2.0 * jnp.pi * omega[None, :] * x_out[:, None] + phase[None, :])
    mix = jax.random.normal(k_mix, (n_modes, n_modes), dtype=jnp.float32) / jnp.sqrt(n_modes)
    # quadrature weight 1/n_in for the discretized integral over the input grid
    return (phi_out @ mix @ phi_in.T) / n_in


def make_params(key, embed_dim, scale, H, W, n_modes=128):
    Ho, Wo = int(round(H * scale)), int(round(W * scale))
    kh_key, kw_key, wmix_key, bias_key = jax.random.split(key, 4)
    kh = _make_axis_projector(kh_key, H, Ho, n_modes)                       # [Ho, H]
    kw = _make_axis_projector(kw_key, W, Wo, n_modes)                       # [Wo, W]
    wmix = jax.random.normal(wmix_key, (embed_dim, embed_dim),
                             dtype=jnp.float32) / jnp.sqrt(embed_dim)       # [Co, C]
    bias = 0.01 * jax.random.normal(bias_key, (embed_dim,), dtype=jnp.float32)
    return kh, kw, wmix, bias


# --------------------------------------------------------------------------
# Reference (plain JAX) for correctness checking.
# --------------------------------------------------------------------------
def reference(v, kh, kw, wmix, bias):
    out = jnp.einsum("oh,bchw,pw->bcop", kh, v, kw)
    out = jnp.einsum("dc,bcop->bdop", wmix, out) + bias[None, :, None, None]
    return out.astype(v.dtype)


if __name__ == "__main__":
    B, embed_dim, H, W = 2, 4, 16, 16
    scale = 2

    key = jax.random.PRNGKey(0)
    k_x, k_p = jax.random.split(key)
    v = jax.random.normal(k_x, (B, embed_dim, H, W), dtype=jnp.float32)

    kh, kw, wmix, bias = make_params(k_p, embed_dim, scale, H, W, n_modes=128)

    out = linear_project_to_new_grid_2d(v, kh, kw, wmix, bias)
    out = jax.block_until_ready(out)

    ref = reference(v, kh, kw, wmix, bias)
    assert out.shape == (B, embed_dim, int(H * scale), int(W * scale)), out.shape
    assert jnp.allclose(out, ref, atol=1e-4, rtol=1e-3), float(jnp.max(jnp.abs(out - ref)))

    print("KERNEL_OK")
</pallas_src>

<mosaic_0001>
module attributes {stable_mosaic.version = 11 : i64} {
  func.func @_project_kernel(%arg0: i32, %arg1: memref<2x4x256xf32, #tpu.memory_space<vmem>>, %arg2: memref<4x4xf32, #tpu.memory_space<vmem>>, %arg3: memref<256x1024xf32, #tpu.memory_space<vmem>>, %arg4: memref<4x1xf32, #tpu.memory_space<vmem>>, %arg5: memref<2x4x1024xf32, #tpu.memory_space<vmem>>) attributes {dimension_semantics = [#tpu.dimension_semantics<parallel>], iteration_bounds = array<i64: 1>, scalar_prefetch = 0 : i64, scratch_operands = 0 : i64, tpu.core_type = #tpu.core_type<tc>, window_params = [{transform_indices = @transform_0, window_bounds = array<i64: 2, 4, 256>}, {pipeline_mode = #tpu.pipeline_mode<synchronous>, transform_indices = @transform_1, window_bounds = array<i64: 4, 4>}, {pipeline_mode = #tpu.pipeline_mode<synchronous>, transform_indices = @transform_2, window_bounds = array<i64: 256, 1024>}, {pipeline_mode = #tpu.pipeline_mode<synchronous>, transform_indices = @transform_3, window_bounds = array<i64: 4, 1>}, {transform_indices = @transform_4, window_bounds = array<i64: 2, 4, 1024>}]} {
    %c0 = arith.constant 0 : index
    %c0_0 = arith.constant 0 : index
    %0 = vector.load %arg2[%c0, %c0_0] : memref<4x4xf32, #tpu.memory_space<vmem>>, vector<4x4xf32>
    %c0_1 = arith.constant 0 : index
    %c0_2 = arith.constant 0 : index
    %c0_3 = arith.constant 0 : index
    %1 = vector.load %arg1[%c0_1, %c0_2, %c0_3] : memref<2x4x256xf32, #tpu.memory_space<vmem>>, vector<1x4x256xf32>
    %2 = vector.shape_cast %1 : vector<1x4x256xf32> to vector<4x256xf32>
    %cst = arith.constant dense<0.000000e+00> : vector<4x256xf32>
    %3 = tpu.matmul %0, %2, %cst {dimension_numbers = #tpu.dot_dimension_numbers<[1], [0], [0], [1], [0, 0, 1, 1], [], []>} : vector<4x4xf32>, vector<4x256xf32>, vector<4x256xf32> -> vector<4x256xf32>
    %c0_4 = arith.constant 0 : index
    %c0_5 = arith.constant 0 : index
    %4 = vector.load %arg3[%c0_4, %c0_5] : memref<256x1024xf32, #tpu.memory_space<vmem>>, vector<256x1024xf32>
    %cst_6 = arith.constant dense<0.000000e+00> : vector<4x1024xf32>
    %5 = tpu.matmul %3, %4, %cst_6 {dimension_numbers = #tpu.dot_dimension_numbers<[1], [0], [0], [1], [0, 0, 1, 1], [], []>} : vector<4x256xf32>, vector<256x1024xf32>, vector<4x1024xf32> -> vector<4x1024xf32>
    %c0_7 = arith.constant 0 : index
    %c0_8 = arith.constant 0 : index
    %6 = vector.load %arg4[%c0_7, %c0_8] : memref<4x1xf32, #tpu.memory_space<vmem>>, vector<4x1xf32>
    %7 = vector.broadcast %6 : vector<4x1xf32> to vector<4x1024xf32>
    %8 = arith.addf %5, %7 : vector<4x1024xf32>
    %c0_9 = arith.constant 0 : index
    %c0_10 = arith.constant 0 : index
    %c0_11 = arith.constant 0 : index
    %9 = vector.load %arg5[%c0_9, %c0_10, %c0_11] : memref<2x4x1024xf32, #tpu.memory_space<vmem>>, vector<1x4x1024xf32>
    %10 = vector.shape_cast %9 : vector<1x4x1024xf32> to vector<4x1024xf32>
    %11 = vector.shape_cast %8 : vector<4x1024xf32> to vector<1x4x1024xf32>
    tpu.vector_store %arg5[%c0_9, %c0_10, %c0_11], %11 {strides = array<i32>} : memref<2x4x1024xf32, #tpu.memory_space<vmem>>, vector<1x4x1024xf32>,
    %c0_12 = arith.constant 0 : index
    %c0_13 = arith.constant 0 : index
    %12 = vector.load %arg2[%c0_12, %c0_13] : memref<4x4xf32, #tpu.memory_space<vmem>>, vector<4x4xf32>
    %c1 = arith.constant 1 : index
    %c0_14 = arith.constant 0 : index
    %c0_15 = arith.constant 0 : index
    %13 = vector.load %arg1[%c1, %c0_14, %c0_15] : memref<2x4x256xf32, #tpu.memory_space<vmem>>, vector<1x4x256xf32>
    %14 = vector.shape_cast %13 : vector<1x4x256xf32> to vector<4x256xf32>
    %cst_16 = arith.constant dense<0.000000e+00> : vector<4x256xf32>
    %15 = tpu.matmul %12, %14, %cst_16 {dimension_numbers = #tpu.dot_dimension_numbers<[1], [0], [0], [1], [0, 0, 1, 1], [], []>} : vector<4x4xf32>, vector<4x256xf32>, vector<4x256xf32> -> vector<4x256xf32>
    %c0_17 = arith.constant 0 : index
    %c0_18 = arith.constant 0 : index
    %16 = vector.load %arg3[%c0_17, %c0_18] : memref<256x1024xf32, #tpu.memory_space<vmem>>, vector<256x1024xf32>
    %cst_19 = arith.constant dense<0.000000e+00> : vector<4x1024xf32>
    %17 = tpu.matmul %15, %16, %cst_19 {dimension_numbers = #tpu.dot_dimension_numbers<[1], [0], [0], [1], [0, 0, 1, 1], [], []>} : vector<4x256xf32>, vector<256x1024xf32>, vector<4x1024xf32> -> vector<4x1024xf32>
    %c0_20 = arith.constant 0 : index
    %c0_21 = arith.constant 0 : index
    %18 = vector.load %arg4[%c0_20, %c0_21] : memref<4x1xf32, #tpu.memory_space<vmem>>, vector<4x1xf32>
    %19 = vector.broadcast %18 : vector<4x1xf32> to vector<4x1024xf32>
    %20 = arith.addf %17, %19 : vector<4x1024xf32>
    %c1_22 = arith.constant 1 : index
    %c0_23 = arith.constant 0 : index
    %c0_24 = arith.constant 0 : index
    %21 = vector.load %arg5[%c1_22, %c0_23, %c0_24] : memref<2x4x1024xf32, #tpu.memory_space<vmem>>, vector<1x4x1024xf32>
    %22 = vector.shape_cast %21 : vector<1x4x1024xf32> to vector<4x1024xf32>
    %23 = vector.shape_cast %20 : vector<4x1024xf32> to vector<1x4x1024xf32>
    tpu.vector_store %arg5[%c1_22, %c0_23, %c0_24], %23 {strides = array<i32>} : memref<2x4x1024xf32, #tpu.memory_space<vmem>>, vector<1x4x1024xf32>,
    return
  }
  func.func @transform_0(%arg0: i32) -> (i32, i32, i32) {
    %c0_i32 = arith.constant 0 : i32
    %c0_i32_0 = arith.constant 0 : i32
    %c0_i32_1 = arith.constant 0 : i32
    return %arg0, %c0_i32, %c0_i32_0 : i32, i32, i32
  }
  func.func @transform_1(%arg0: i32) -> (i32, i32) {
    %c0_i32 = arith.constant 0 : i32
    %c0_i32_0 = arith.constant 0 : i32
    %c0_i32_1 = arith.constant 0 : i32
    return %c0_i32, %c0_i32_0 : i32, i32
  }
  func.func @transform_2(%arg0: i32) -> (i32, i32) {
    %c0_i32 = arith.constant 0 : i32
    %c0_i32_0 = arith.constant 0 : i32
    %c0_i32_1 = arith.constant 0 : i32
    return %c0_i32, %c0_i32_0 : i32, i32
  }
  func.func @transform_3(%arg0: i32) -> (i32, i32) {
    %c0_i32 = arith.constant 0 : i32
    %c0_i32_0 = arith.constant 0 : i32
    %c0_i32_1 = arith.constant 0 : i32
    return %c0_i32, %c0_i32_0 : i32, i32
  }
  func.func @transform_4(%arg0: i32) -> (i32, i32, i32) {
    %c0_i32 = arith.constant 0 : i32
    %c0_i32_0 = arith.constant 0 : i32
    %c0_i32_1 = arith.constant 0 : i32
    return %arg0, %c0_i32, %c0_i32_0 : i32, i32, i32
  }
}

</mosaic_0001>

<bundles_post_ra>
// kernel: linear_project_to_new_grid_2d.1
= control target key start
LH: loop header
LB: loop body
LE: loop exit
PB: predicated region body
PF: predicated region fallthrough
CT: control target
= control target key end

     0   :  { %vm25_vm0 = vcmask 1043456   ;;  %v1849_v1 = vmov 0.0   ;;  %vm21_vm1 = vcmask 31744   ;;  %s3474_s0 = inlined_call_operand.vmem [shape: f32[2,4,256], index: 0, kind: input, shape index: {}]   ;;  %s3475_s1 = inlined_call_operand.vmem [shape: f32[4,4], index: 1, kind: input, shape index: {}]   ;;  %s3476_s2 = inlined_call_operand.vmem [shape: f32[256,1024], index: 2, kind: input, shape index: {}]   ;;  %s3477_s3 = inlined_call_operand.vmem [shape: f32[4,1], index: 3, kind: input, shape index: {}]   ;;  %s3478_s4 = inlined_call_operand.vmem [shape: f32[2,4,1024], index: 4, kind: output, shape index: {}]  }
   0x1   :  { %v18_v0 = vld [vmem:[%s3474_s0] sm:$0xff]  ;;  %94 = vmatprep.mubr.f32.mxu0 %v1849_v1  ;;  %v102_v4 = vld [vmem:[%s3476_s2 + $0x8] sm:$0xff]  ;;  %v104_v7 = vld [vmem:[%s3476_s2 + $0x18] sm:$0xff] }
   0x2   :  { %v20_v2 = vcombine.high %v18_v0, %v18_v0  ;;  %v17_v3 = vld [vmem:[%s3475_s1] sm:$0xf]  ;;  %v110_v5 = vld [vmem:[%s3476_s2 + $0x48] sm:$0xff]  ;;  %v112_v8 = vld [vmem:[%s3476_s2 + $0x58] sm:$0xff] }
   0x3   :  { %v1332_v6 = vpack.c.bf16 %v110_v5, %v102_v4  ;;  %v101_v9 = vld [vmem:[%s3476_s2] sm:$0xff]  ;;  %v1396_v10 = vpack.c.bf16 %v112_v8, %v104_v7  ;;  %v103_v12 = vld [vmem:[%s3476_s2 + $0x10] sm:$0xff]  ;;  %v118_v16 = vld [vmem:[%s3476_s2 + $0x88] sm:$0xff] }
   0x4   :  { %1321 = vmatprep.subr.msk.mxu0 %vm25_vm0, %v20_v2  ;;  %v109_v11 = vld [vmem:[%s3476_s2 + $0x40] sm:$0xff]  ;;  %v111_v13 = vld [vmem:[%s3476_s2 + $0x50] sm:$0xff]  ;;  %v126_v17 = vld [vmem:[%s3476_s2 + $0xc8] sm:$0xff] }
   0x5   :  { %1322 = vmatpush1.msk.msra.mxu0 %vm25_vm0, %v18_v0  ;;  %1333 = vmatprep.subr.bf16.mxu1 %v1332_v6  ;;  %v1334_v14 = vpack.c.bf16 %v109_v11, %v101_v9  ;;  %v1398_v15 = vpack.c.bf16 %v111_v13, %v103_v12  ;;  %v120_v18 = vld [vmem:[%s3476_s2 + $0x98] sm:$0xff]  ;;  %v1336_v19 = vpack.c.bf16 %v126_v17, %v118_v16  ;;  %v117_v21 = vld [vmem:[%s3476_s2 + $0x80] sm:$0xff]  ;;  %v119_v25 = vld [vmem:[%s3476_s2 + $0x90] sm:$0xff] }
   0x6   :  { %1323 = vmatmul.mubr.msk.f32.vlgmr.msra.gmra.mrb[0].mxu0 %vm21_vm1, %v17_v3  ;;  %1397 = vmatprep.subr.bf16.mxu0 %v1396_v10  ;;  %v128_v20 = vld [vmem:[%s3476_s2 + $0xd8] sm:$0xff]  ;;  %v125_v22 = vld [vmem:[%s3476_s2 + $0xc0] sm:$0xff]  ;;  %v127_v26 = vld [vmem:[%s3476_s2 + $0xd0] sm:$0xff] }
   0x7   :  { %1335 = vmatpush1.bf16.msra.mxu1 %v1334_v14  ;;  %1399 = vmatpush1.bf16.msra.mxu0 %v1398_v15  ;;  %v1400_v23 = vpack.c.bf16 %v128_v20, %v120_v18  ;;  %v1338_v24 = vpack.c.bf16 %v125_v22, %v117_v21  ;;  %v134_v27 = vld [vmem:[%s3476_s2 + $0x108] sm:$0xff]  ;;  %v1402_v28 = vpack.c.bf16 %v127_v26, %v119_v25  ;;  %v136_v30 = vld [vmem:[%s3476_s2 + $0x118] sm:$0xff]  ;;  %v133_v34 = vld [vmem:[%s3476_s2 + $0x100] sm:$0xff] }
   0x8   :  { %1337 = vmatprep.subr.bf16.mxu1 %v1336_v19  ;;  %v142_v29 = vld [vmem:[%s3476_s2 + $0x148] sm:$0xff]  ;;  %v144_v31 = vld [vmem:[%s3476_s2 + $0x158] sm:$0xff]  ;;  %v141_v35 = vld [vmem:[%s3476_s2 + $0x140] sm:$0xff] }
   0x9   :  { %1401 = vmatprep.subr.bf16.mxu0 %v1400_v23  ;;  %v1340_v32 = vpack.c.bf16 %v142_v29, %v134_v27  ;;  %v1404_v33 = vpack.c.bf16 %v144_v31, %v136_v30  ;;  %v135_v36 = vld [vmem:[%s3476_s2 + $0x110] sm:$0xff]  ;;  %v150_v38 = vld [vmem:[%s3476_s2 + $0x188] sm:$0xff]  ;;  %v1342_v40 = vpack.c.bf16 %v141_v35, %v133_v34  ;;  %v152_v42 = vld [vmem:[%s3476_s2 + $0x198] sm:$0xff] }
   0xa   :  { %v143_v37 = vld [vmem:[%s3476_s2 + $0x150] sm:$0xff]  ;;  %v158_v39 = vld [vmem:[%s3476_s2 + $0x1c8] sm:$0xff]  ;;  %v160_v43 = vld [vmem:[%s3476_s2 + $0x1d8] sm:$0xff] }
   0xb   :  { %1339 = vmatpush1.bf16.msra.mxu1 %v1338_v24  ;;  %1403 = vmatpush1.bf16.msra.mxu0 %v1402_v28  ;;  %v1406_v41 = vpack.c.bf16 %v143_v37, %v135_v36  ;;  %v149_v44 = vld [vmem:[%s3476_s2 + $0x180] sm:$0xff]  ;;  %v1344_v45 = vpack.c.bf16 %v158_v39, %v150_v38  ;;  %v1408_v46 = vpack.c.bf16 %v160_v43, %v152_v42  ;;  %v151_v48 = vld [vmem:[%s3476_s2 + $0x190] sm:$0xff]  ;;  %v166_v50 = vld [vmem:[%s3476_s2 + $0x208] sm:$0xff] }
   0xc   :  { %1341 = vmatprep.subr.bf16.mxu1 %v1340_v32  ;;  %1405 = vmatprep.subr.bf16.mxu0 %v1404_v33  ;;  %v157_v47 = vld [vmem:[%s3476_s2 + $0x1c0] sm:$0xff]  ;;  %v159_v49 = vld [vmem:[%s3476_s2 + $0x1d0] sm:$0xff]  ;;  %v174_v51 = vld [vmem:[%s3476_s2 + $0x248] sm:$0xff] }
   0xd   :  { %v168_v52 = vld [vmem:[%s3476_s2 + $0x218] sm:$0xff]  ;;  %v1346_v54 = vpack.c.bf16 %v157_v47, %v149_v44  ;;  %v1410_v55 = vpack.c.bf16 %v159_v49, %v151_v48  ;;  %v165_v56 = vld [vmem:[%s3476_s2 + $0x200] sm:$0xff]  ;;  %v1348_v58 = vpack.c.bf16 %v174_v51, %v166_v50  ;;  %v167_v60 = vld [vmem:[%s3476_s2 + $0x210] sm:$0xff] }
   0xe   :  { %v176_v53 = vld [vmem:[%s3476_s2 + $0x258] sm:$0xff]  ;;  %v173_v57 = vld [vmem:[%s3476_s2 + $0x240] sm:$0xff]  ;;  %v175_v61 = vld [vmem:[%s3476_s2 + $0x250] sm:$0xff] }
   0xf   :  { %1343 = vmatpush1.bf16.msra.mxu1 %v1342_v40  ;;  %1407 = vmatpush1.bf16.msra.mxu0 %v1406_v41  ;;  %v1412_v59 = vpack.c.bf16 %v176_v53, %v168_v52  ;;  %v182_v62 = vld [vmem:[%s3476_s2 + $0x288] sm:$0xff]  ;;  %v184_v0 = vld [vmem:[%s3476_s2 + $0x298] sm:$0xff]  ;;  %v1350_v3 = vpack.c.bf16 %v173_v57, %v165_v56  ;;  %v1414_v4 = vpack.c.bf16 %v175_v61, %v167_v60  ;;  %v181_v5 = vld [vmem:[%s3476_s2 + $0x280] sm:$0xff] }
  0x10   :  { %1345 = vmatprep.subr.bf16.mxu1 %v1344_v45  ;;  %1409 = vmatprep.subr.bf16.mxu0 %v1408_v46  ;;  %v190_v63 = vld [vmem:[%s3476_s2 + $0x2c8] sm:$0xff]  ;;  %v192_v2 = vld [vmem:[%s3476_s2 + $0x2d8] sm:$0xff]  ;;  %v189_v6 = vld [vmem:[%s3476_s2 + $0x2c0] sm:$0xff] }
  0x11   :  { %v1352_v7 = vpack.c.bf16 %v190_v63, %v182_v62  ;;  %v1416_v8 = vpack.c.bf16 %v192_v2, %v184_v0  ;;  %v183_v9 = vld [vmem:[%s3476_s2 + $0x290] sm:$0xff]  ;;  %v198_v11 = vld [vmem:[%s3476_s2 + $0x308] sm:$0xff]  ;;  %v200_v13 = vld [vmem:[%s3476_s2 + $0x318] sm:$0xff]  ;;  %v1354_v15 = vpack.c.bf16 %v189_v6, %v181_v5 }
  0x12   :  { %v191_v10 = vld [vmem:[%s3476_s2 + $0x2d0] sm:$0xff]  ;;  %v206_v12 = vld [vmem:[%s3476_s2 + $0x348] sm:$0xff]  ;;  %v208_v14 = vld [vmem:[%s3476_s2 + $0x358] sm:$0xff] }
  0x13   :  { %1347 = vmatpush1.bf16.msra.mxu1 %v1346_v54  ;;  %1411 = vmatpush1.bf16.msra.mxu0 %v1410_v55  ;;  %v1418_v16 = vpack.c.bf16 %v191_v10, %v183_v9  ;;  %v197_v17 = vld [vmem:[%s3476_s2 + $0x300] sm:$0xff]  ;;  %v1356_v19 = vpack.c.bf16 %v206_v12, %v198_v11  ;;  %v1420_v20 = vpack.c.bf16 %v208_v14, %v200_v13  ;;  %v199_v21 = vld [vmem:[%s3476_s2 + $0x310] sm:$0xff]  ;;  %v214_v23 = vld [vmem:[%s3476_s2 + $0x388] sm:$0xff] }
  0x14   :  { %1349 = vmatprep.subr.bf16.mxu1 %v1348_v58  ;;  %1413 = vmatprep.subr.bf16.mxu0 %v1412_v59  ;;  %v205_v18 = vld [vmem:[%s3476_s2 + $0x340] sm:$0xff]  ;;  %v207_v22 = vld [vmem:[%s3476_s2 + $0x350] sm:$0xff]  ;;  %v222_v24 = vld [vmem:[%s3476_s2 + $0x3c8] sm:$0xff] }
  0x15   :  { %v216_v25 = vld [vmem:[%s3476_s2 + $0x398] sm:$0xff]  ;;  %v1358_v27 = vpack.c.bf16 %v205_v18, %v197_v17  ;;  %v1422_v28 = vpack.c.bf16 %v207_v22, %v199_v21  ;;  %v213_v29 = vld [vmem:[%s3476_s2 + $0x380] sm:$0xff]  ;;  %v1360_v31 = vpack.c.bf16 %v222_v24, %v214_v23  ;;  %v215_v33 = vld [vmem:[%s3476_s2 + $0x390] sm:$0xff] }
  0x16   :  { %v224_v26 = vld [vmem:[%s3476_s2 + $0x3d8] sm:$0xff]  ;;  %v221_v30 = vld [vmem:[%s3476_s2 + $0x3c0] sm:$0xff]  ;;  %v223_v34 = vld [vmem:[%s3476_s2 + $0x3d0] sm:$0xff] }
  0x17   :  { %1351 = vmatpush1.bf16.msra.mxu1 %v1350_v3  ;;  %1415 = vmatpush1.bf16.msra.mxu0 %v1414_v4  ;;  %v1424_v32 = vpack.c.bf16 %v224_v26, %v216_v25  ;;  %v230_v35 = vld [vmem:[%s3476_s2 + $0x408] sm:$0xff]  ;;  %v232_v37 = vld [vmem:[%s3476_s2 + $0x418] sm:$0xff]  ;;  %v1362_v39 = vpack.c.bf16 %v221_v30, %v213_v29  ;;  %v1426_v40 = vpack.c.bf16 %v223_v34, %v215_v33  ;;  %v229_v41 = vld [vmem:[%s3476_s2 + $0x400] sm:$0xff] }
  0x18   :  { %1353 = vmatprep.subr.bf16.mxu1 %v1352_v7  ;;  %1417 = vmatprep.subr.bf16.mxu0 %v1416_v8  ;;  %v238_v36 = vld [vmem:[%s3476_s2 + $0x448] sm:$0xff]  ;;  %v240_v38 = vld [vmem:[%s3476_s2 + $0x458] sm:$0xff]  ;;  %v237_v42 = vld [vmem:[%s3476_s2 + $0x440] sm:$0xff] }
  0x19   :  { %v1364_v43 = vpack.c.bf16 %v238_v36, %v230_v35  ;;  %v1428_v44 = vpack.c.bf16 %v240_v38, %v232_v37  ;;  %v231_v45 = vld [vmem:[%s3476_s2 + $0x410] sm:$0xff]  ;;  %v246_v47 = vld [vmem:[%s3476_s2 + $0x488] sm:$0xff]  ;;  %v248_v49 = vld [vmem:[%s3476_s2 + $0x498] sm:$0xff]  ;;  %v1366_v51 = vpack.c.bf16 %v237_v42, %v229_v41 }
  0x1a   :  { %v239_v46 = vld [vmem:[%s3476_s2 + $0x450] sm:$0xff]  ;;  %v254_v48 = vld [vmem:[%s3476_s2 + $0x4c8] sm:$0xff]  ;;  %v256_v50 = vld [vmem:[%s3476_s2 + $0x4d8] sm:$0xff] }
  0x1b   :  { %1355 = vmatpush1.bf16.msra.mxu1 %v1354_v15  ;;  %1419 = vmatpush1.bf16.msra.mxu0 %v1418_v16  ;;  %v1430_v52 = vpack.c.bf16 %v239_v46, %v231_v45  ;;  %v245_v53 = vld [vmem:[%s3476_s2 + $0x480] sm:$0xff]  ;;  %v1368_v55 = vpack.c.bf16 %v254_v48, %v246_v47  ;;  %v1432_v56 = vpack.c.bf16 %v256_v50, %v248_v49  ;;  %v247_v57 = vld [vmem:[%s3476_s2 + $0x490] sm:$0xff]  ;;  %v262_v59 = vld [vmem:[%s3476_s2 + $0x508] sm:$0xff] }
  0x1c   :  { %1357 = vmatprep.subr.bf16.mxu1 %v1356_v19  ;;  %1421 = vmatprep.subr.bf16.mxu0 %v1420_v20  ;;  %v253_v54 = vld [vmem:[%s3476_s2 + $0x4c0] sm:$0xff]  ;;  %v255_v58 = vld [vmem:[%s3476_s2 + $0x4d0] sm:$0xff]  ;;  %v270_v60 = vld [vmem:[%s3476_s2 + $0x548] sm:$0xff] }
  0x1d   :  { %v264_v61 = vld [vmem:[%s3476_s2 + $0x518] sm:$0xff]  ;;  %v1370_v63 = vpack.c.bf16 %v253_v54, %v245_v53  ;;  %v1434_v0 = vpack.c.bf16 %v255_v58, %v247_v57  ;;  %v261_v2 = vld [vmem:[%s3476_s2 + $0x500] sm:$0xff]  ;;  %v1372_v4 = vpack.c.bf16 %v270_v60, %v262_v59  ;;  %v263_v6 = vld [vmem:[%s3476_s2 + $0x510] sm:$0xff] }
  0x1e   :  { %v272_v62 = vld [vmem:[%s3476_s2 + $0x558] sm:$0xff]  ;;  %v269_v3 = vld [vmem:[%s3476_s2 + $0x540] sm:$0xff]  ;;  %v271_v7 = vld [vmem:[%s3476_s2 + $0x550] sm:$0xff] }
  0x1f   :  { %1359 = vmatpush1.bf16.msra.mxu1 %v1358_v27  ;;  %1423 = vmatpush1.bf16.msra.mxu0 %v1422_v28  ;;  %v1436_v5 = vpack.c.bf16 %v272_v62, %v264_v61  ;;  %v278_v8 = vld [vmem:[%s3476_s2 + $0x588] sm:$0xff]  ;;  %v280_v10 = vld [vmem:[%s3476_s2 + $0x598] sm:$0xff]  ;;  %v1374_v12 = vpack.c.bf16 %v269_v3, %v261_v2  ;;  %v1438_v13 = vpack.c.bf16 %v271_v7, %v263_v6  ;;  %v277_v14 = vld [vmem:[%s3476_s2 + $0x580] sm:$0xff] }
  0x20   :  { %1361 = vmatprep.subr.bf16.mxu1 %v1360_v31  ;;  %1425 = vmatprep.subr.bf16.mxu0 %v1424_v32  ;;  %v286_v9 = vld [vmem:[%s3476_s2 + $0x5c8] sm:$0xff]  ;;  %v288_v11 = vld [vmem:[%s3476_s2 + $0x5d8] sm:$0xff]  ;;  %v285_v15 = vld [vmem:[%s3476_s2 + $0x5c0] sm:$0xff] }
  0x21   :  { %v1376_v16 = vpack.c.bf16 %v286_v9, %v278_v8  ;;  %v1440_v17 = vpack.c.bf16 %v288_v11, %v280_v10  ;;  %v279_v18 = vld [vmem:[%s3476_s2 + $0x590] sm:$0xff]  ;;  %v294_v20 = vld [vmem:[%s3476_s2 + $0x608] sm:$0xff]  ;;  %v296_v22 = vld [vmem:[%s3476_s2 + $0x618] sm:$0xff]  ;;  %v1378_v24 = vpack.c.bf16 %v285_v15, %v277_v14 }
  0x22   :  { %v287_v19 = vld [vmem:[%s3476_s2 + $0x5d0] sm:$0xff]  ;;  %v302_v21 = vld [vmem:[%s3476_s2 + $0x648] sm:$0xff]  ;;  %v304_v23 = vld [vmem:[%s3476_s2 + $0x658] sm:$0xff] }
  0x23   :  { %1363 = vmatpush1.bf16.msra.mxu1 %v1362_v39  ;;  %1427 = vmatpush1.bf16.msra.mxu0 %v1426_v40  ;;  %v1442_v25 = vpack.c.bf16 %v287_v19, %v279_v18  ;;  %v293_v26 = vld [vmem:[%s3476_s2 + $0x600] sm:$0xff]  ;;  %v1380_v28 = vpack.c.bf16 %v302_v21, %v294_v20  ;;  %v1444_v29 = vpack.c.bf16 %v304_v23, %v296_v22  ;;  %v295_v30 = vld [vmem:[%s3476_s2 + $0x610] sm:$0xff]  ;;  %v310_v32 = vld [vmem:[%s3476_s2 + $0x688] sm:$0xff] }
  0x24   :  { %1365 = vmatprep.subr.bf16.mxu1 %v1364_v43  ;;  %1429 = vmatprep.subr.bf16.mxu0 %v1428_v44  ;;  %v301_v27 = vld [vmem:[%s3476_s2 + $0x640] sm:$0xff]  ;;  %v303_v31 = vld [vmem:[%s3476_s2 + $0x650] sm:$0xff]  ;;  %v318_v33 = vld [vmem:[%s3476_s2 + $0x6c8] sm:$0xff] }
  0x25   :  { %v312_v34 = vld [vmem:[%s3476_s2 + $0x698] sm:$0xff]  ;;  %v1382_v36 = vpack.c.bf16 %v301_v27, %v293_v26  ;;  %v1446_v37 = vpack.c.bf16 %v303_v31, %v295_v30  ;;  %v309_v38 = vld [vmem:[%s3476_s2 + $0x680] sm:$0xff]  ;;  %v1384_v40 = vpack.c.bf16 %v318_v33, %v310_v32  ;;  %v311_v42 = vld [vmem:[%s3476_s2 + $0x690] sm:$0xff] }
  0x26   :  { %v320_v35 = vld [vmem:[%s3476_s2 + $0x6d8] sm:$0xff]  ;;  %v317_v39 = vld [vmem:[%s3476_s2 + $0x6c0] sm:$0xff]  ;;  %v319_v43 = vld [vmem:[%s3476_s2 + $0x6d0] sm:$0xff] }
  0x27   :  { %1367 = vmatpush1.bf16.msra.mxu1 %v1366_v51  ;;  %1431 = vmatpush1.bf16.msra.mxu0 %v1430_v52  ;;  %v1448_v41 = vpack.c.bf16 %v320_v35, %v312_v34  ;;  %v326_v44 = vld [vmem:[%s3476_s2 + $0x708] sm:$0xff]  ;;  %v328_v46 = vld [vmem:[%s3476_s2 + $0x718] sm:$0xff]  ;;  %v1386_v48 = vpack.c.bf16 %v317_v39, %v309_v38  ;;  %v1450_v49 = vpack.c.bf16 %v319_v43, %v311_v42  ;;  %v325_v50 = vld [vmem:[%s3476_s2 + $0x700] sm:$0xff] }
  0x28   :  { %1369 = vmatprep.subr.bf16.mxu1 %v1368_v55  ;;  %1433 = vmatprep.subr.bf16.mxu0 %v1432_v56  ;;  %v334_v45 = vld [vmem:[%s3476_s2 + $0x748] sm:$0xff]  ;;  %v336_v47 = vld [vmem:[%s3476_s2 + $0x758] sm:$0xff]  ;;  %v333_v51 = vld [vmem:[%s3476_s2 + $0x740] sm:$0xff] }
  0x29   :  { %v1388_v52 = vpack.c.bf16 %v334_v45, %v326_v44  ;;  %v1452_v53 = vpack.c.bf16 %v336_v47, %v328_v46  ;;  %v327_v54 = vld [vmem:[%s3476_s2 + $0x710] sm:$0xff]  ;;  %v342_v56 = vld [vmem:[%s3476_s2 + $0x788] sm:$0xff]  ;;  %v344_v58 = vld [vmem:[%s3476_s2 + $0x798] sm:$0xff]  ;;  %v1390_v60 = vpack.c.bf16 %v333_v51, %v325_v50 }
  0x2a   :  { %v335_v55 = vld [vmem:[%s3476_s2 + $0x750] sm:$0xff]  ;;  %v350_v57 = vld [vmem:[%s3476_s2 + $0x7c8] sm:$0xff]  ;;  %v352_v59 = vld [vmem:[%s3476_s2 + $0x7d8] sm:$0xff] }
  0x2b   :  { %1371 = vmatpush1.bf16.msra.mxu1 %v1370_v63  ;;  %1435 = vmatpush1.bf16.msra.mxu0 %v1434_v0  ;;  %v1454_v61 = vpack.c.bf16 %v335_v55, %v327_v54  ;;  %v341_v62 = vld [vmem:[%s3476_s2 + $0x780] sm:$0xff]  ;;  %v1392_v63 = vpack.c.bf16 %v350_v57, %v342_v56  ;;  %v1456_v0 = vpack.c.bf16 %v352_v59, %v344_v58  ;;  %v343_v3 = vld [vmem:[%s3476_s2 + $0x790] sm:$0xff]  ;;  %v106_v7 = vld [vmem:[%s3476_s2 + $0x28] sm:$0xff] }
  0x2c   :  { %1373 = vmatprep.subr.bf16.mxu1 %v1372_v4  ;;  %1437 = vmatprep.subr.bf16.mxu0 %v1436_v5  ;;  %v349_v2 = vld [vmem:[%s3476_s2 + $0x7c0] sm:$0xff]  ;;  %v351_v4 = vld [vmem:[%s3476_s2 + $0x7d0] sm:$0xff]  ;;  %v114_v8 = vld [vmem:[%s3476_s2 + $0x68] sm:$0xff] }
  0x2d   :  { %v1394_v5 = vpack.c.bf16 %v349_v2, %v341_v62  ;;  %v1458_v6 = vpack.c.bf16 %v351_v4, %v343_v3  ;;  %v108_v9 = vld [vmem:[%s3476_s2 + $0x38] sm:$0xff]  ;;  %v1460_v10 = vpack.c.bf16 %v114_v8, %v106_v7  ;;  %v357_v14 = vld [vmem:[%s3477_s3] sm:$0xf]  ;;  %v115_v18 = vld [vmem:[%s3476_s2 + $0x70] sm:$0xff] }
  0x2e   :  { %v116_v11 = vld [vmem:[%s3476_s2 + $0x78] sm:$0xff]  ;;  %v105_v15 = vld [vmem:[%s3476_s2 + $0x20] sm:$0xff]  ;;  %v122_v19 = vld [vmem:[%s3476_s2 + $0xa8] sm:$0xff] }
  0x2f   :  { %1375 = vmatpush1.bf16.msra.mxu1 %v1374_v12  ;;  %1439 = vmatpush1.bf16.msra.mxu0 %v1438_v13  ;;  %v1524_v12 = vpack.c.bf16 %v116_v11, %v108_v9  ;;  %v1850_v13 = vmov 0   ;;  %v130_v20 = vld [vmem:[%s3476_s2 + $0xe8] sm:$0xff]  ;;  %v124_v21 = vld [vmem:[%s3476_s2 + $0xb8] sm:$0xff]  ;;  %v121_v26 = vld [vmem:[%s3476_s2 + $0xa0] sm:$0xff] }
  0x30   :  { %1377 = vmatprep.subr.bf16.mxu1 %v1376_v16  ;;  %1441 = vmatprep.subr.bf16.mxu0 %v1440_v17  ;;  %v113_v16 = vld [vmem:[%s3476_s2 + $0x60] sm:$0xff]  ;;  %v107_v17 = vld [vmem:[%s3476_s2 + $0x30] sm:$0xff]  ;;  %v132_v22 = vld [vmem:[%s3476_s2 + $0xf8] sm:$0xff]  ;;  %v1464_v32 = vpack.c.bf16 %v130_v20, %v122_v19 }
  0x31   :  { %1846 = vset.pattern.permute.xlu0 %v1850_v13  ;;  %v129_v27 = vld [vmem:[%s3476_s2 + $0xe0] sm:$0xff]  ;;  %v131_v30 = vld [vmem:[%s3476_s2 + $0xf0] sm:$0xff]  ;;  %v138_v31 = vld [vmem:[%s3476_s2 + $0x128] sm:$0xff]  ;;  %v1528_v33 = vpack.c.bf16 %v132_v22, %v124_v21 }
  0x32   :  { %360 = vperm.xlu0 %1846, %v357_v14   ;;  %v146_v34 = vld [vmem:[%s3476_s2 + $0x168] sm:$0xff]  ;;  %v140_v35 = vld [vmem:[%s3476_s2 + $0x138] sm:$0xff]  ;;  %v137_v39 = vld [vmem:[%s3476_s2 + $0x120] sm:$0xff] }
  0x33   :  { %1379 = vmatpush1.bf16.msra.mxu1 %v1378_v24  ;;  %1443 = vmatpush1.bf16.msra.mxu0 %v1442_v25  ;;  %v1462_v24 = vpack.c.bf16 %v113_v16, %v105_v15  ;;  %v1526_v25 = vpack.c.bf16 %v115_v18, %v107_v17  ;;  %v139_v43 = vld [vmem:[%s3476_s2 + $0x130] sm:$0xff]  ;;  %v154_v45 = vld [vmem:[%s3476_s2 + $0x1a8] sm:$0xff]  ;;  %v156_v47 = vld [vmem:[%s3476_s2 + $0x1b8] sm:$0xff] }
  0x34   :  { %1381 = vmatprep.subr.bf16.mxu1 %v1380_v28  ;;  %1445 = vmatprep.subr.bf16.mxu0 %v1444_v29  ;;  %v123_v29 = vld [vmem:[%s3476_s2 + $0xb0] sm:$0xff]  ;;  %v162_v46 = vld [vmem:[%s3476_s2 + $0x1e8] sm:$0xff]  ;;  %v153_v51 = vld [vmem:[%s3476_s2 + $0x1a0] sm:$0xff] }
  0x35   :  { %v1530_v38 = vpack.c.bf16 %v131_v30, %v123_v29  ;;  %v147_v44 = vld [vmem:[%s3476_s2 + $0x170] sm:$0xff]  ;;  %v170_v57 = vld [vmem:[%s3476_s2 + $0x228] sm:$0xff]  ;;  %v172_v59 = vld [vmem:[%s3476_s2 + $0x238] sm:$0xff] }
  0x36   :  { %v1534_v50 = vpack.c.bf16 %v147_v44, %v139_v43  ;;  %v155_v55 = vld [vmem:[%s3476_s2 + $0x1b0] sm:$0xff]  ;;  %v178_v58 = vld [vmem:[%s3476_s2 + $0x268] sm:$0xff]  ;;  %v188_v8 = vld [vmem:[%s3476_s2 + $0x2b8] sm:$0xff] }
  0x37   :  { %1383 = vmatpush1.bf16.msra.mxu1 %v1382_v36  ;;  %1447 = vmatpush1.bf16.msra.mxu0 %v1446_v37  ;;  %v148_v36 = vld [vmem:[%s3476_s2 + $0x178] sm:$0xff]  ;;  %v1466_v37 = vpack.c.bf16 %v129_v27, %v121_v26  ;;  %v163_v56 = vld [vmem:[%s3476_s2 + $0x1f0] sm:$0xff]  ;;  %v1476_v2 = vpack.c.bf16 %v178_v58, %v170_v57  ;;  %v194_v7 = vld [vmem:[%s3476_s2 + $0x2e8] sm:$0xff] }
  0x38   :  { %1385 = vmatprep.subr.bf16.mxu1 %v1384_v40  ;;  %1449 = vmatprep.subr.bf16.mxu0 %v1448_v41  ;;  %v145_v40 = vld [vmem:[%s3476_s2 + $0x160] sm:$0xff]  ;;  %v1468_v41 = vpack.c.bf16 %v146_v34, %v138_v31  ;;  %v1532_v42 = vpack.c.bf16 %v148_v36, %v140_v35  ;;  %v1538_v62 = vpack.c.bf16 %v163_v56, %v155_v55  ;;  %v171_v4 = vld [vmem:[%s3476_s2 + $0x230] sm:$0xff]  ;;  %v196_v9 = vld [vmem:[%s3476_s2 + $0x2f8] sm:$0xff] }
  0x39   :  { %v193_v13 = vld [vmem:[%s3476_s2 + $0x2e0] sm:$0xff]  ;;  %v1544_v15 = vpack.c.bf16 %v196_v9, %v188_v8  ;;  %v187_v16 = vld [vmem:[%s3476_s2 + $0x2b0] sm:$0xff]  ;;  %v202_v18 = vld [vmem:[%s3476_s2 + $0x328] sm:$0xff] }
  0x3a   :  { %v195_v17 = vld [vmem:[%s3476_s2 + $0x2f0] sm:$0xff]  ;;  %v210_v19 = vld [vmem:[%s3476_s2 + $0x368] sm:$0xff]  ;;  %v204_v20 = vld [vmem:[%s3476_s2 + $0x338] sm:$0xff] }
  0x3b   :  { %1387 = vmatpush1.bf16.msra.mxu1 %v1386_v48  ;;  %1451 = vmatpush1.bf16.msra.mxu0 %v1450_v49  ;;  %v164_v48 = vld [vmem:[%s3476_s2 + $0x1f8] sm:$0xff]  ;;  %v1470_v49 = vpack.c.bf16 %v145_v40, %v137_v39  ;;  %v209_v26 = vld [vmem:[%s3476_s2 + $0x360] sm:$0xff]  ;;  %v1484_v27 = vpack.c.bf16 %v210_v19, %v202_v18  ;;  %v203_v29 = vld [vmem:[%s3476_s2 + $0x330] sm:$0xff] }
  0x3c   :  { %1389 = vmatprep.subr.bf16.mxu1 %v1388_v52  ;;  %1453 = vmatprep.subr.bf16.mxu0 %v1452_v53  ;;  %v161_v52 = vld [vmem:[%s3476_s2 + $0x1e0] sm:$0xff]  ;;  %v1472_v53 = vpack.c.bf16 %v162_v46, %v154_v45  ;;  %v1536_v54 = vpack.c.bf16 %v164_v48, %v156_v47  ;;  %v212_v21 = vld [vmem:[%s3476_s2 + $0x378] sm:$0xff]  ;;  %v211_v30 = vld [vmem:[%s3476_s2 + $0x370] sm:$0xff] }
  0x3d   :  { %v218_v31 = vld [vmem:[%s3476_s2 + $0x3a8] sm:$0xff]  ;;  %v228_v34 = vld [vmem:[%s3476_s2 + $0x3f8] sm:$0xff]  ;;  %v1550_v36 = vpack.c.bf16 %v211_v30, %v203_v29 }
  0x3e   :  { %v234_v43 = vld [vmem:[%s3476_s2 + $0x428] sm:$0xff]  ;;  %v236_v45 = vld [vmem:[%s3476_s2 + $0x438] sm:$0xff] }
  0x3f   :  { %1391 = vmatpush1.bf16.msra.mxu1 %v1390_v60  ;;  %1455 = vmatpush1.bf16.msra.mxu0 %v1454_v61  ;;  %v180_v60 = vld [vmem:[%s3476_s2 + $0x278] sm:$0xff]  ;;  %v1474_v61 = vpack.c.bf16 %v161_v52, %v153_v51  ;;  %v242_v44 = vld [vmem:[%s3476_s2 + $0x468] sm:$0xff] }
  0x40   :  { %1393 = vmatprep.subr.bf16.mxu1 %v1392_v63  ;;  %1457 = vmatprep.subr.bf16.mxu0 %v1456_v0  ;;  %v169_v63 = vld [vmem:[%s3476_s2 + $0x220] sm:$0xff]  ;;  %v1540_v3 = vpack.c.bf16 %v180_v60, %v172_v59  ;;  %v244_v46 = vld [vmem:[%s3476_s2 + $0x478] sm:$0xff]  ;;  %v1492_v51 = vpack.c.bf16 %v242_v44, %v234_v43  ;;  %v250_v55 = vld [vmem:[%s3476_s2 + $0x4a8] sm:$0xff] }
  0x41   :  { %v177_v0 = vld [vmem:[%s3476_s2 + $0x260] sm:$0xff]  ;;  %v1556_v52 = vpack.c.bf16 %v244_v46, %v236_v45  ;;  %v258_v56 = vld [vmem:[%s3476_s2 + $0x4e8] sm:$0xff]  ;;  %v252_v57 = vld [vmem:[%s3476_s2 + $0x4b8] sm:$0xff] }
  0x42   :  { %v260_v58 = vld [vmem:[%s3476_s2 + $0x4f8] sm:$0xff]  ;;  %v298_v29 = vld [vmem:[%s3476_s2 + $0x628] sm:$0xff] }
  0x43   :  { %1395 = vmatpush1.bf16.msra.mxu1 %v1394_v5  ;;  %1459 = vmatpush1.bf16.msra.mxu0 %v1458_v6  ;;  %v179_v5 = vld [vmem:[%s3476_s2 + $0x270] sm:$0xff]  ;;  %v186_v6 = vld [vmem:[%s3476_s2 + $0x2a8] sm:$0xff]  ;;  %v284_v18 = vld [vmem:[%s3476_s2 + $0x5b8] sm:$0xff] }
  0x44   :  { %1461 = vmatprep.subr.bf16.mxu1 %v1460_v10  ;;  %1525 = vmatprep.subr.bf16.mxu0 %v1524_v12  ;;  %v1478_v10 = vpack.c.bf16 %v177_v0, %v169_v63  ;;  %v1542_v11 = vpack.c.bf16 %v179_v5, %v171_v4  ;;  %v185_v12 = vld [vmem:[%s3476_s2 + $0x2a0] sm:$0xff]  ;;  %v1480_v14 = vpack.c.bf16 %v194_v7, %v186_v6  ;;  %v266_v4 = vld [vmem:[%s3476_s2 + $0x528] sm:$0xff]  ;;  %v268_v6 = vld [vmem:[%s3476_s2 + $0x538] sm:$0xff] }
  0x45   :  { %v1482_v22 = vpack.c.bf16 %v193_v13, %v185_v12  ;;  %v1496_v63 = vpack.c.bf16 %v258_v56, %v250_v55  ;;  %v1560_v0 = vpack.c.bf16 %v260_v58, %v252_v57  ;;  %v274_v5 = vld [vmem:[%s3476_s2 + $0x568] sm:$0xff]  ;;  %v276_v7 = vld [vmem:[%s3476_s2 + $0x578] sm:$0xff] }
  0x46   :  { %v1500_v12 = vpack.c.bf16 %v274_v5, %v266_v4  ;;  %v1564_v13 = vpack.c.bf16 %v276_v7, %v268_v6  ;;  %v292_v19 = vld [vmem:[%s3476_s2 + $0x5f8] sm:$0xff]  ;;  %v306_v30 = vld [vmem:[%s3476_s2 + $0x668] sm:$0xff] }
  0x47   :  { %v316_v43 = vld [vmem:[%s3476_s2 + $0x6b8] sm:$0xff] }
  0x48   :  { %v324_v44 = vld [vmem:[%s3476_s2 + $0x6f8] sm:$0xff] }
  0x49   :  { %v332_v55 = vld [vmem:[%s3476_s2 + $0x738] sm:$0xff] }
  0x4a   :  { %v340_v56 = vld [vmem:[%s3476_s2 + $0x778] sm:$0xff] }
  0x4b   :  { %v348_v4 = vld [vmem:[%s3476_s2 + $0x7b8] sm:$0xff] }
  0x4c   :  { %v356_v5 = vld [vmem:[%s3476_s2 + $0x7f8] sm:$0xff] }
  0xd9   :  { %v2309_v23 = vpop.f32.mrb[0].mxu0 }
  0xda   :  { %v98_v28 = vpop.f32.mrb[1].mxu0 }
  0xdb   :  { %427 = vmatprep.mubr.f32.mxu1 %v98_v28  ;;  %498 = vmatprep.mubr.f32.mxu0 %v98_v28 }
  0xdc   :  { %428 = vmatmul.mubr.f32.vlgmr.msra.gmra.mrb[0].mxu1 %v2309_v23  ;;  %499 = vmatmul.mubr.f32.vlgmr.msra.gmra.mrb[2].mxu0 %v2309_v23 }
  0xdd   :  { %1463 = vmatpush1.bf16.msra.mxu1 %v1462_v24  ;;  %1527 = vmatpush1.bf16.msra.mxu0 %v1526_v25  ;;  %v1546_v24 = vpack.c.bf16 %v195_v17, %v187_v16  ;;  %v201_v25 = vld [vmem:[%s3476_s2 + $0x320] sm:$0xff]  ;;  %v282_v16 = vld [vmem:[%s3476_s2 + $0x5a8] sm:$0xff] }
  0xde   :  { %569 = vmatprep.mubr.f32.mxu1 %v98_v28  ;;  %640 = vmatprep.mubr.f32.mxu0 %v98_v28  ;;  %v1548_v28 = vpack.c.bf16 %v212_v21, %v204_v20  ;;  %v1486_v35 = vpack.c.bf16 %v209_v26, %v201_v25  ;;  %v290_v17 = vld [vmem:[%s3476_s2 + $0x5e8] sm:$0xff]  ;;  %v1568_v26 = vpack.c.bf16 %v292_v19, %v284_v18  ;;  %v667_v18 = vld [vmem:[%s3475_s1] sm:$0xf] }
  0xdf   :  { %1465 = vmatprep.subr.bf16.mxu1 %v1464_v32  ;;  %1529 = vmatprep.subr.bf16.mxu0 %v1528_v33  ;;  %v226_v32 = vld [vmem:[%s3476_s2 + $0x3e8] sm:$0xff]  ;;  %v220_v33 = vld [vmem:[%s3476_s2 + $0x3b8] sm:$0xff]  ;;  %v1504_v25 = vpack.c.bf16 %v290_v17, %v282_v16 }
  0xe0   :  { %v1488_v39 = vpack.c.bf16 %v226_v32, %v218_v31  ;;  %v1552_v40 = vpack.c.bf16 %v228_v34, %v220_v33  ;;  %v300_v31 = vld [vmem:[%s3476_s2 + $0x638] sm:$0xff]  ;;  %v751_v19 = vld [vmem:[%s3476_s2 + $0x8] sm:$0xff] }
  0xe1   :  { %1467 = vmatpush1.bf16.msra.mxu1 %v1466_v37  ;;  %1531 = vmatpush1.bf16.msra.mxu0 %v1530_v38  ;;  %v217_v37 = vld [vmem:[%s3476_s2 + $0x3a0] sm:$0xff]  ;;  %v308_v32 = vld [vmem:[%s3476_s2 + $0x678] sm:$0xff] }
  0xe2   :  { %1469 = vmatprep.subr.bf16.mxu1 %v1468_v41  ;;  %1533 = vmatprep.subr.bf16.mxu0 %v1532_v42  ;;  %v225_v38 = vld [vmem:[%s3476_s2 + $0x3e0] sm:$0xff]  ;;  %v219_v41 = vld [vmem:[%s3476_s2 + $0x3b0] sm:$0xff] }
  0xe3   :  { %v227_v42 = vld [vmem:[%s3476_s2 + $0x3f0] sm:$0xff]  ;;  %v1490_v47 = vpack.c.bf16 %v225_v38, %v217_v37  ;;  %v1508_v37 = vpack.c.bf16 %v306_v30, %v298_v29  ;;  %v1572_v38 = vpack.c.bf16 %v308_v32, %v300_v31  ;;  %v767_v30 = vld [vmem:[%s3476_s2 + $0x88] sm:$0xff]  ;;  %v769_v32 = vld [vmem:[%s3476_s2 + $0x98] sm:$0xff] }
  0xe4   :  { %v1554_v48 = vpack.c.bf16 %v227_v42, %v219_v41  ;;  %v314_v41 = vld [vmem:[%s3476_s2 + $0x6a8] sm:$0xff] }
  0xe5   :  { %1471 = vmatpush1.bf16.msra.mxu1 %v1470_v49  ;;  %1535 = vmatpush1.bf16.msra.mxu0 %v1534_v50  ;;  %v233_v49 = vld [vmem:[%s3476_s2 + $0x420] sm:$0xff]  ;;  %v322_v42 = vld [vmem:[%s3476_s2 + $0x6e8] sm:$0xff] }
  0xe6   :  { %1473 = vmatprep.subr.bf16.mxu1 %v1472_v53  ;;  %1537 = vmatprep.subr.bf16.mxu0 %v1536_v54  ;;  %v241_v50 = vld [vmem:[%s3476_s2 + $0x460] sm:$0xff]  ;;  %v235_v53 = vld [vmem:[%s3476_s2 + $0x430] sm:$0xff]  ;;  %v775_v31 = vld [vmem:[%s3476_s2 + $0xc8] sm:$0xff] }
  0xe7   :  { %v243_v54 = vld [vmem:[%s3476_s2 + $0x470] sm:$0xff]  ;;  %v1494_v59 = vpack.c.bf16 %v241_v50, %v233_v49  ;;  %v1512_v49 = vpack.c.bf16 %v322_v42, %v314_v41  ;;  %v1576_v50 = vpack.c.bf16 %v324_v44, %v316_v43  ;;  %v783_v41 = vld [vmem:[%s3476_s2 + $0x108] sm:$0xff]  ;;  %v785_v44 = vld [vmem:[%s3476_s2 + $0x118] sm:$0xff] }
  0xe8   :  { %v1558_v60 = vpack.c.bf16 %v243_v54, %v235_v53  ;;  %v330_v53 = vld [vmem:[%s3476_s2 + $0x728] sm:$0xff] }
  0xe9   :  { %1475 = vmatpush1.bf16.msra.mxu1 %v1474_v61  ;;  %1539 = vmatpush1.bf16.msra.mxu0 %v1538_v62  ;;  %v249_v61 = vld [vmem:[%s3476_s2 + $0x4a0] sm:$0xff]  ;;  %v338_v54 = vld [vmem:[%s3476_s2 + $0x768] sm:$0xff] }
  0xea   :  { %1477 = vmatprep.subr.bf16.mxu1 %v1476_v2  ;;  %1541 = vmatprep.subr.bf16.mxu0 %v1540_v3  ;;  %v257_v62 = vld [vmem:[%s3476_s2 + $0x4e0] sm:$0xff]  ;;  %v251_v2 = vld [vmem:[%s3476_s2 + $0x4b0] sm:$0xff]  ;;  %v791_v43 = vld [vmem:[%s3476_s2 + $0x148] sm:$0xff] }
  0xeb   :  { %v259_v3 = vld [vmem:[%s3476_s2 + $0x4f0] sm:$0xff]  ;;  %v1498_v8 = vpack.c.bf16 %v257_v62, %v249_v61  ;;  %v1516_v61 = vpack.c.bf16 %v338_v54, %v330_v53  ;;  %v1580_v62 = vpack.c.bf16 %v340_v56, %v332_v55  ;;  %v799_v53 = vld [vmem:[%s3476_s2 + $0x188] sm:$0xff] }
  0xec   :  { %v1562_v9 = vpack.c.bf16 %v259_v3, %v251_v2  ;;  %v346_v2 = vld [vmem:[%s3476_s2 + $0x7a8] sm:$0xff] }
  0xed   :  { %1479 = vmatpush1.bf16.msra.mxu1 %v1478_v10  ;;  %1543 = vmatpush1.bf16.msra.mxu0 %v1542_v11  ;;  %v265_v10 = vld [vmem:[%s3476_s2 + $0x520] sm:$0xff]  ;;  %v354_v3 = vld [vmem:[%s3476_s2 + $0x7e8] sm:$0xff] }
  0xee   :  { %1481 = vmatprep.subr.bf16.mxu1 %v1480_v14  ;;  %1545 = vmatprep.subr.bf16.mxu0 %v1544_v15  ;;  %v273_v11 = vld [vmem:[%s3476_s2 + $0x560] sm:$0xff]  ;;  %v267_v14 = vld [vmem:[%s3476_s2 + $0x530] sm:$0xff]  ;;  %v807_v54 = vld [vmem:[%s3476_s2 + $0x1c8] sm:$0xff] }
  0xef   :  { %v275_v15 = vld [vmem:[%s3476_s2 + $0x570] sm:$0xff]  ;;  %v1502_v20 = vpack.c.bf16 %v273_v11, %v265_v10  ;;  %v1584_v10 = vpack.c.bf16 %v356_v5, %v348_v4  ;;  %v353_v11 = vld [vmem:[%s3476_s2 + $0x7e0] sm:$0xff]  ;;  %v1600_v56 = vpack.c.bf16 %v807_v54, %v799_v53  ;;  %v825_v5 = vld [vmem:[%s3476_s2 + $0x258] sm:$0xff] }
  0xf0   :  { %v1566_v21 = vpack.c.bf16 %v275_v15, %v267_v14  ;;  %v1324_v14 = vld [vmem:[%s3474_s0 + $0x8] sm:$0xff] }
  0xf1   :  { %1483 = vmatpush1.bf16.msra.mxu1 %v1482_v22  ;;  %1547 = vmatpush1.bf16.msra.mxu0 %v1546_v24  ;;  %v281_v22 = vld [vmem:[%s3476_s2 + $0x5a0] sm:$0xff]  ;;  %v671_v17 = vcombine.high %v1324_v14, %v1324_v14 }
  0xf2   :  { %1485 = vmatprep.subr.bf16.mxu1 %v1484_v27  ;;  %1549 = vmatprep.subr.bf16.mxu0 %v1548_v28  ;;  %v289_v24 = vld [vmem:[%s3476_s2 + $0x5e0] sm:$0xff]  ;;  %v283_v27 = vld [vmem:[%s3476_s2 + $0x5b0] sm:$0xff] }
  0xf3   :  { %v291_v28 = vld [vmem:[%s3476_s2 + $0x5f0] sm:$0xff]  ;;  %v1506_v33 = vpack.c.bf16 %v289_v24, %v281_v22  ;;  %v761_v22 = vld [vmem:[%s3476_s2 + $0x58] sm:$0xff]  ;;  %v758_v24 = vld [vmem:[%s3476_s2 + $0x40] sm:$0xff] }
  0xf4   :  { %v1570_v34 = vpack.c.bf16 %v291_v28, %v283_v27  ;;  %v752_v27 = vld [vmem:[%s3476_s2 + $0x10] sm:$0xff] }
  0xf5   :  { %1487 = vmatpush1.bf16.msra.mxu1 %v1486_v35  ;;  %1551 = vmatpush1.bf16.msra.mxu0 %v1550_v36  ;;  %v297_v35 = vld [vmem:[%s3476_s2 + $0x620] sm:$0xff]  ;;  %v760_v28 = vld [vmem:[%s3476_s2 + $0x50] sm:$0xff] }
  0xf6   :  { %1489 = vmatprep.subr.bf16.mxu1 %v1488_v39  ;;  %1553 = vmatprep.subr.bf16.mxu0 %v1552_v40  ;;  %v305_v36 = vld [vmem:[%s3476_s2 + $0x660] sm:$0xff]  ;;  %v299_v39 = vld [vmem:[%s3476_s2 + $0x630] sm:$0xff]  ;;  %v1654_v29 = vpack.c.bf16 %v760_v28, %v752_v27  ;;  %v857_v27 = vld [vmem:[%s3476_s2 + $0x358] sm:$0xff] }
  0xf7   :  { %v307_v40 = vld [vmem:[%s3476_s2 + $0x670] sm:$0xff]  ;;  %v1510_v45 = vpack.c.bf16 %v305_v36, %v297_v35  ;;  %v766_v35 = vld [vmem:[%s3476_s2 + $0x80] sm:$0xff] }
  0xf8   :  { %v1574_v46 = vpack.c.bf16 %v307_v40, %v299_v39  ;;  %v774_v36 = vld [vmem:[%s3476_s2 + $0xc0] sm:$0xff]  ;;  %v768_v39 = vld [vmem:[%s3476_s2 + $0x90] sm:$0xff] }
  0xf9   :  { %1491 = vmatpush1.bf16.msra.mxu1 %v1490_v47  ;;  %1555 = vmatpush1.bf16.msra.mxu0 %v1554_v48  ;;  %v313_v47 = vld [vmem:[%s3476_s2 + $0x6a0] sm:$0xff]  ;;  %v776_v40 = vld [vmem:[%s3476_s2 + $0xd0] sm:$0xff] }
  0xfa   :  { %1493 = vmatprep.subr.bf16.mxu1 %v1492_v51  ;;  %1557 = vmatprep.subr.bf16.mxu0 %v1556_v52  ;;  %v321_v48 = vld [vmem:[%s3476_s2 + $0x6e0] sm:$0xff]  ;;  %v315_v51 = vld [vmem:[%s3476_s2 + $0x6b0] sm:$0xff]  ;;  %v1658_v42 = vpack.c.bf16 %v776_v40, %v768_v39  ;;  %v873_v39 = vld [vmem:[%s3476_s2 + $0x3d8] sm:$0xff] }
  0xfb   :  { %v323_v52 = vld [vmem:[%s3476_s2 + $0x6f0] sm:$0xff]  ;;  %v1514_v57 = vpack.c.bf16 %v321_v48, %v313_v47  ;;  %v782_v48 = vld [vmem:[%s3476_s2 + $0x100] sm:$0xff] }
  0xfc   :  { %v1578_v58 = vpack.c.bf16 %v323_v52, %v315_v51  ;;  %v792_v52 = vld [vmem:[%s3476_s2 + $0x150] sm:$0xff] }
  0xfd   :  { %1495 = vmatpush1.bf16.msra.mxu1 %v1494_v59  ;;  %1559 = vmatpush1.bf16.msra.mxu0 %v1558_v60  ;;  %v329_v59 = vld [vmem:[%s3476_s2 + $0x720] sm:$0xff] }
  0xfe   :  { %1497 = vmatprep.subr.bf16.mxu1 %v1496_v63  ;;  %1561 = vmatprep.subr.bf16.mxu0 %v1560_v0  ;;  %v337_v60 = vld [vmem:[%s3476_s2 + $0x760] sm:$0xff]  ;;  %v331_v63 = vld [vmem:[%s3476_s2 + $0x730] sm:$0xff] }
  0xff   :  { %v339_v0 = vld [vmem:[%s3476_s2 + $0x770] sm:$0xff]  ;;  %v1518_v6 = vpack.c.bf16 %v337_v60, %v329_v59  ;;  %v798_v59 = vld [vmem:[%s3476_s2 + $0x180] sm:$0xff] }
 0x100   :  { %v1582_v7 = vpack.c.bf16 %v339_v0, %v331_v63  ;;  %v808_v63 = vld [vmem:[%s3476_s2 + $0x1d0] sm:$0xff]  ;;  %v815_v0 = vld [vmem:[%s3476_s2 + $0x208] sm:$0xff] }
 0x101   :  { %1499 = vmatpush1.bf16.msra.mxu1 %v1498_v8  ;;  %1563 = vmatpush1.bf16.msra.mxu0 %v1562_v9  ;;  %v345_v8 = vld [vmem:[%s3476_s2 + $0x7a0] sm:$0xff]  ;;  %v1520_v9 = vpack.c.bf16 %v354_v3, %v346_v2  ;;  %v823_v2 = vld [vmem:[%s3476_s2 + $0x248] sm:$0xff]  ;;  %v817_v3 = vld [vmem:[%s3476_s2 + $0x218] sm:$0xff] }
 0x102   :  { %1501 = vmatprep.subr.bf16.mxu1 %v1500_v12  ;;  %1565 = vmatprep.subr.bf16.mxu0 %v1564_v13  ;;  %v347_v12 = vld [vmem:[%s3476_s2 + $0x7b0] sm:$0xff]  ;;  %v1522_v15 = vpack.c.bf16 %v353_v11, %v345_v8  ;;  %v814_v8 = vld [vmem:[%s3476_s2 + $0x200] sm:$0xff]  ;;  %v1668_v11 = vpack.c.bf16 %v825_v5, %v817_v3 }
 0x103   :  { %v355_v13 = vld [vmem:[%s3476_s2 + $0x7f0] sm:$0xff]  ;;  %v902_v5 = vld [vmem:[%s3476_s2 + $0x4c0] sm:$0xff] }
 0x104   :  { %v1586_v16 = vpack.c.bf16 %v355_v13, %v347_v12  ;;  %v824_v12 = vld [vmem:[%s3476_s2 + $0x250] sm:$0xff]  ;;  %v831_v13 = vld [vmem:[%s3476_s2 + $0x288] sm:$0xff] }
 0x105   :  { %1503 = vmatpush1.bf16.msra.mxu1 %v1502_v20  ;;  %1567 = vmatpush1.bf16.msra.mxu0 %v1566_v21  ;;  %v759_v20 = vld [vmem:[%s3476_s2 + $0x48] sm:$0xff] }
 0x106   :  { %1505 = vmatprep.subr.bf16.mxu1 %v1504_v25  ;;  %1569 = vmatprep.subr.bf16.mxu0 %v1568_v26  ;;  %v1588_v21 = vpack.c.bf16 %v759_v20, %v751_v19  ;;  %v830_v20 = vld [vmem:[%s3476_s2 + $0x280] sm:$0xff] }
 0x109   :  { %1507 = vmatpush1.bf16.msra.mxu1 %v1506_v33  ;;  %1571 = vmatpush1.bf16.msra.mxu0 %v1570_v34  ;;  %v1592_v33 = vpack.c.bf16 %v775_v31, %v767_v30  ;;  %v777_v34 = vld [vmem:[%s3476_s2 + $0xd8] sm:$0xff]  ;;  %v846_v31 = vld [vmem:[%s3476_s2 + $0x300] sm:$0xff] }
 0x10a   :  { %1509 = vmatprep.subr.bf16.mxu1 %v1508_v37  ;;  %1573 = vmatprep.subr.bf16.mxu0 %v1572_v38  ;;  %v1656_v37 = vpack.c.bf16 %v777_v34, %v769_v32  ;;  %v1594_v38 = vpack.c.bf16 %v774_v36, %v766_v35  ;;  %v854_v32 = vld [vmem:[%s3476_s2 + $0x340] sm:$0xff]  ;;  %v856_v35 = vld [vmem:[%s3476_s2 + $0x350] sm:$0xff]  ;;  %v863_v36 = vld [vmem:[%s3476_s2 + $0x388] sm:$0xff] }
 0x10b   :  { %v1614_v40 = vpack.c.bf16 %v854_v32, %v846_v31  ;;  %v936_v31 = vld [vmem:[%s3476_s2 + $0x5d0] sm:$0xff]  ;;  %v943_v32 = vld [vmem:[%s3476_s2 + $0x608] sm:$0xff] }
 0x10d   :  { %1511 = vmatpush1.bf16.msra.mxu1 %v1510_v45  ;;  %1575 = vmatpush1.bf16.msra.mxu0 %v1574_v46  ;;  %v793_v45 = vld [vmem:[%s3476_s2 + $0x158] sm:$0xff]  ;;  %v1596_v46 = vpack.c.bf16 %v791_v43, %v783_v41  ;;  %v862_v43 = vld [vmem:[%s3476_s2 + $0x380] sm:$0xff] }
 0x10e   :  { %1513 = vmatprep.subr.bf16.mxu1 %v1512_v49  ;;  %1577 = vmatprep.subr.bf16.mxu0 %v1576_v50  ;;  %v1660_v47 = vpack.c.bf16 %v793_v45, %v785_v44  ;;  %v790_v49 = vld [vmem:[%s3476_s2 + $0x140] sm:$0xff]  ;;  %v784_v50 = vld [vmem:[%s3476_s2 + $0x110] sm:$0xff] }
 0x10f   :  { %v1598_v51 = vpack.c.bf16 %v790_v49, %v782_v48  ;;  %v1662_v55 = vpack.c.bf16 %v792_v52, %v784_v50  ;;  %v870_v44 = vld [vmem:[%s3476_s2 + $0x3c0] sm:$0xff]  ;;  %v864_v45 = vld [vmem:[%s3476_s2 + $0x390] sm:$0xff]  ;;  %v879_v48 = vld [vmem:[%s3476_s2 + $0x408] sm:$0xff] }
 0x110   :  { %v887_v49 = vld [vmem:[%s3476_s2 + $0x448] sm:$0xff]  ;;  %v881_v50 = vld [vmem:[%s3476_s2 + $0x418] sm:$0xff]  ;;  %v1618_v52 = vpack.c.bf16 %v870_v44, %v862_v43  ;;  %v952_v43 = vld [vmem:[%s3476_s2 + $0x650] sm:$0xff] }
 0x111   :  { %1515 = vmatpush1.bf16.msra.mxu1 %v1514_v57  ;;  %1579 = vmatpush1.bf16.msra.mxu0 %v1578_v58  ;;  %v801_v57 = vld [vmem:[%s3476_s2 + $0x198] sm:$0xff]  ;;  %v1620_v54 = vpack.c.bf16 %v887_v49, %v879_v48  ;;  %v959_v44 = vld [vmem:[%s3476_s2 + $0x688] sm:$0xff] }
 0x112   :  { %1517 = vmatprep.subr.bf16.mxu1 %v1516_v61  ;;  %1581 = vmatprep.subr.bf16.mxu0 %v1580_v62  ;;  %v809_v58 = vld [vmem:[%s3476_s2 + $0x1d8] sm:$0xff]  ;;  %v806_v61 = vld [vmem:[%s3476_s2 + $0x1c0] sm:$0xff]  ;;  %v800_v62 = vld [vmem:[%s3476_s2 + $0x190] sm:$0xff] }
 0x113   :  { %v1664_v60 = vpack.c.bf16 %v809_v58, %v801_v57  ;;  %v1602_v4 = vpack.c.bf16 %v806_v61, %v798_v59  ;;  %v880_v57 = vld [vmem:[%s3476_s2 + $0x410] sm:$0xff]  ;;  %v903_v61 = vld [vmem:[%s3476_s2 + $0x4c8] sm:$0xff] }
 0x114   :  { %v888_v59 = vld [vmem:[%s3476_s2 + $0x450] sm:$0xff] }
 0x115   :  { %1519 = vmatpush1.bf16.msra.mxu1 %v1518_v6  ;;  %1583 = vmatpush1.bf16.msra.mxu0 %v1582_v7  ;;  %v1666_v6 = vpack.c.bf16 %v808_v63, %v800_v62  ;;  %v1604_v7 = vpack.c.bf16 %v823_v2, %v815_v0  ;;  %v897_v62 = vld [vmem:[%s3476_s2 + $0x498] sm:$0xff]  ;;  %v1686_v2 = vpack.c.bf16 %v888_v59, %v880_v57  ;;  %v983_v57 = vld [vmem:[%s3476_s2 + $0x748] sm:$0xff] }
 0x116   :  { %1521 = vmatprep.subr.bf16.mxu1 %v1520_v9  ;;  %1585 = vmatprep.subr.bf16.mxu0 %v1584_v10  ;;  %v822_v9 = vld [vmem:[%s3476_s2 + $0x240] sm:$0xff]  ;;  %v816_v10 = vld [vmem:[%s3476_s2 + $0x210] sm:$0xff]  ;;  %v905_v63 = vld [vmem:[%s3476_s2 + $0x4d8] sm:$0xff] }
 0x117   :  { %v985_v59 = vld [vmem:[%s3476_s2 + $0x758] sm:$0xff] }
 0x119   :  { %1523 = vmatpush1.bf16.msra.mxu1 %v1522_v15  ;;  %1587 = vmatpush1.bf16.msra.mxu0 %v1586_v16  ;;  %v833_v15 = vld [vmem:[%s3476_s2 + $0x298] sm:$0xff] }
 0x11a   :  { %1325 = vmatprep.subr.msk.mxu1 %vm25_vm0, %v671_v17  ;;  %1589 = vmatprep.subr.bf16.mxu0 %v1588_v21  ;;  %v841_v16 = vld [vmem:[%s3476_s2 + $0x2d8] sm:$0xff]  ;;  %v1606_v17 = vpack.c.bf16 %v822_v9, %v814_v8  ;;  %v832_v21 = vld [vmem:[%s3476_s2 + $0x290] sm:$0xff]  ;;  %v911_v9 = vld [vmem:[%s3476_s2 + $0x508] sm:$0xff] }
 0x11b   :  { %v904_v8 = vld [vmem:[%s3476_s2 + $0x4d0] sm:$0xff] }
 0x11c   :  { %570 = vmatmul.mubr.f32.vlgmr.msra.gmra.mrb[2].mxu1 %v2309_v23  ;;  %641 = vmatmul.mubr.f32.vlgmr.msra.gmra.mrb[4].mxu0 %v2309_v23  ;;  %v753_v23 = vld [vmem:[%s3476_s2 + $0x18] sm:$0xff] }
 0x11d   :  { %1326 = vmatpush1.msk.msra.mxu1 %vm25_vm0, %v1324_v14  ;;  %743 = vmatprep.mubr.f32.mxu1 %v1849_v1  ;;  %v750_v1 = vld [vmem:[%s3476_s2] sm:$0xff]  ;;  %v1652_v25 = vpack.c.bf16 %v761_v22, %v753_v23  ;;  %v839_v14 = vld [vmem:[%s3476_s2 + $0x2c8] sm:$0xff]  ;;  %v1672_v22 = vpack.c.bf16 %v841_v16, %v833_v15 }
 0x11e   :  { %v1590_v26 = vpack.c.bf16 %v758_v24, %v750_v1  ;;  %v1608_v19 = vpack.c.bf16 %v839_v14, %v831_v13  ;;  %v838_v23 = vld [vmem:[%s3476_s2 + $0x2c0] sm:$0xff]  ;;  %v840_v1 = vld [vmem:[%s3476_s2 + $0x2d0] sm:$0xff]  ;;  %v847_v24 = vld [vmem:[%s3476_s2 + $0x308] sm:$0xff] }
 0x11f   :  { %1653 = vmatprep.subr.bf16.mxu1 %v1652_v25  ;;  %v855_v25 = vld [vmem:[%s3476_s2 + $0x348] sm:$0xff]  ;;  %v1610_v28 = vpack.c.bf16 %v838_v23, %v830_v20  ;;  %v910_v16 = vld [vmem:[%s3476_s2 + $0x500] sm:$0xff]  ;;  %v920_v20 = vld [vmem:[%s3476_s2 + $0x550] sm:$0xff] }
 0x120   :  { %1327 = vmatmul.mubr.msk.f32.vlgmr.msra.gmra.mrb[4].mxu1 %vm21_vm1, %v667_v18  ;;  %1591 = vmatpush1.bf16.msra.mxu0 %v1590_v26  ;;  %v1670_v18 = vpack.c.bf16 %v824_v12, %v816_v10  ;;  %v849_v26 = vld [vmem:[%s3476_s2 + $0x318] sm:$0xff]  ;;  %v1612_v30 = vpack.c.bf16 %v855_v25, %v847_v24  ;;  %v919_v10 = vld [vmem:[%s3476_s2 + $0x548] sm:$0xff] }
 0x121   :  { %1655 = vmatpush1.bf16.msra.mxu1 %v1654_v29  ;;  %1593 = vmatprep.subr.bf16.mxu0 %v1592_v33  ;;  %v1674_v29 = vpack.c.bf16 %v840_v1, %v832_v21  ;;  %v848_v33 = vld [vmem:[%s3476_s2 + $0x310] sm:$0xff]  ;;  %v1676_v34 = vpack.c.bf16 %v857_v27, %v849_v26  ;;  %v921_v12 = vld [vmem:[%s3476_s2 + $0x558] sm:$0xff]  ;;  %v1628_v15 = vpack.c.bf16 %v919_v10, %v911_v9  ;;  %v927_v23 = vld [vmem:[%s3476_s2 + $0x588] sm:$0xff] }
 0x122   :  { %1657 = vmatprep.subr.bf16.mxu1 %v1656_v37  ;;  %v871_v37 = vld [vmem:[%s3476_s2 + $0x3c8] sm:$0xff]  ;;  %v1678_v41 = vpack.c.bf16 %v856_v35, %v848_v33  ;;  %v937_v1 = vld [vmem:[%s3476_s2 + $0x5d8] sm:$0xff]  ;;  %v926_v27 = vld [vmem:[%s3476_s2 + $0x580] sm:$0xff] }
 0x123   :  { %v935_v21 = vld [vmem:[%s3476_s2 + $0x5c8] sm:$0xff]  ;;  %v953_v35 = vld [vmem:[%s3476_s2 + $0x658] sm:$0xff] }
 0x124   :  { %1595 = vmatpush1.bf16.msra.mxu0 %v1594_v38  ;;  %v865_v38 = vld [vmem:[%s3476_s2 + $0x398] sm:$0xff]  ;;  %v1632_v26 = vpack.c.bf16 %v935_v21, %v927_v23  ;;  %v951_v33 = vld [vmem:[%s3476_s2 + $0x648] sm:$0xff] }
 0x125   :  { %1659 = vmatpush1.bf16.msra.mxu1 %v1658_v42  ;;  %1597 = vmatprep.subr.bf16.mxu0 %v1596_v46  ;;  %v1616_v42 = vpack.c.bf16 %v871_v37, %v863_v36  ;;  %v1680_v46 = vpack.c.bf16 %v873_v39, %v865_v38  ;;  %v1636_v38 = vpack.c.bf16 %v951_v33, %v943_v32  ;;  %v942_v39 = vld [vmem:[%s3476_s2 + $0x600] sm:$0xff]  ;;  %v993_v9 = vld [vmem:[%s3476_s2 + $0x798] sm:$0xff] }
 0x126   :  { %1661 = vmatprep.subr.bf16.mxu1 %v1660_v47  ;;  %v872_v47 = vld [vmem:[%s3476_s2 + $0x3d0] sm:$0xff]  ;;  %v757_v23 = vld [vmem:[%s3476_s2 + $0x38] sm:$0xff] }
 0x127   :  { %v1682_v53 = vpack.c.bf16 %v872_v47, %v864_v45  ;;  %v967_v45 = vld [vmem:[%s3476_s2 + $0x6c8] sm:$0xff]  ;;  %v969_v47 = vld [vmem:[%s3476_s2 + $0x6d8] sm:$0xff] }
 0x128   :  { %1599 = vmatpush1.bf16.msra.mxu0 %v1598_v51  ;;  %v889_v51 = vld [vmem:[%s3476_s2 + $0x458] sm:$0xff] }
 0x129   :  { %1663 = vmatpush1.bf16.msra.mxu1 %v1662_v55  ;;  %1601 = vmatprep.subr.bf16.mxu0 %v1600_v56  ;;  %v878_v55 = vld [vmem:[%s3476_s2 + $0x400] sm:$0xff]  ;;  %v1684_v58 = vpack.c.bf16 %v889_v51, %v881_v50  ;;  %v1640_v50 = vpack.c.bf16 %v967_v45, %v959_v44  ;;  %v756_v44 = vld [vmem:[%s3476_s2 + $0x30] sm:$0xff] }
 0x12a   :  { %1665 = vmatprep.subr.bf16.mxu1 %v1664_v60  ;;  %v886_v56 = vld [vmem:[%s3476_s2 + $0x440] sm:$0xff]  ;;  %v895_v60 = vld [vmem:[%s3476_s2 + $0x488] sm:$0xff]  ;;  %v764_v45 = vld [vmem:[%s3476_s2 + $0x70] sm:$0xff] }
 0x12b   :  { %v1622_v0 = vpack.c.bf16 %v886_v56, %v878_v55  ;;  %v1624_v3 = vpack.c.bf16 %v903_v61, %v895_v60  ;;  %v958_v51 = vld [vmem:[%s3476_s2 + $0x680] sm:$0xff]  ;;  %v968_v55 = vld [vmem:[%s3476_s2 + $0x6d0] sm:$0xff]  ;;  %v975_v56 = vld [vmem:[%s3476_s2 + $0x708] sm:$0xff] }
 0x12c   :  { %1603 = vmatpush1.bf16.msra.mxu0 %v1602_v4  ;;  %v894_v4 = vld [vmem:[%s3476_s2 + $0x480] sm:$0xff] }
 0x12d   :  { %1667 = vmatpush1.bf16.msra.mxu1 %v1666_v6  ;;  %1605 = vmatprep.subr.bf16.mxu0 %v1604_v7  ;;  %v896_v6 = vld [vmem:[%s3476_s2 + $0x490] sm:$0xff]  ;;  %v1688_v7 = vpack.c.bf16 %v905_v63, %v897_v62  ;;  %v1626_v13 = vpack.c.bf16 %v902_v5, %v894_v4  ;;  %v1644_v62 = vpack.c.bf16 %v983_v57, %v975_v56  ;;  %v974_v63 = vld [vmem:[%s3476_s2 + $0x700] sm:$0xff] }
 0x12e   :  { %1669 = vmatprep.subr.bf16.mxu1 %v1668_v11  ;;  %v913_v11 = vld [vmem:[%s3476_s2 + $0x518] sm:$0xff]  ;;  %v1690_v14 = vpack.c.bf16 %v904_v8, %v896_v6  ;;  %v984_v4 = vld [vmem:[%s3476_s2 + $0x750] sm:$0xff]  ;;  %v999_v8 = vld [vmem:[%s3476_s2 + $0x7c8] sm:$0xff]  ;;  %v1782_v56 = vpack.c.bf16 %v764_v45, %v756_v44 }
 0x12f   :  { %v770_v57 = vld [vmem:[%s3476_s2 + $0xa0] sm:$0xff] }
 0x130   :  { %1607 = vmatpush1.bf16.msra.mxu0 %v1606_v17  ;;  %v918_v17 = vld [vmem:[%s3476_s2 + $0x540] sm:$0xff] }
 0x131   :  { %1671 = vmatpush1.bf16.msra.mxu1 %v1670_v18  ;;  %1609 = vmatprep.subr.bf16.mxu0 %v1608_v19  ;;  %v912_v18 = vld [vmem:[%s3476_s2 + $0x510] sm:$0xff]  ;;  %v1692_v19 = vpack.c.bf16 %v921_v12, %v913_v11  ;;  %v1630_v24 = vpack.c.bf16 %v918_v17, %v910_v16  ;;  %v1001_v11 = vld [vmem:[%s3476_s2 + $0x7d8] sm:$0xff]  ;;  %v990_v12 = vld [vmem:[%s3476_s2 + $0x780] sm:$0xff] }
 0x132   :  { %1673 = vmatprep.subr.bf16.mxu1 %v1672_v22  ;;  %v929_v22 = vld [vmem:[%s3476_s2 + $0x598] sm:$0xff]  ;;  %v1694_v25 = vpack.c.bf16 %v920_v20, %v912_v18  ;;  %v992_v16 = vld [vmem:[%s3476_s2 + $0x790] sm:$0xff]  ;;  %v763_v20 = vld [vmem:[%s3476_s2 + $0x68] sm:$0xff] }
 0x133   :  { %v1000_v17 = vld [vmem:[%s3476_s2 + $0x7d0] sm:$0xff] }
 0x134   :  { %1611 = vmatpush1.bf16.msra.mxu0 %v1610_v28  ;;  %v934_v28 = vld [vmem:[%s3476_s2 + $0x5c0] sm:$0xff]  ;;  %v1714_v18 = vpack.c.bf16 %v1000_v17, %v992_v16  ;;  %v813_v16 = vld [vmem:[%s3476_s2 + $0x1f8] sm:$0xff] }
 0x135   :  { %1675 = vmatpush1.bf16.msra.mxu1 %v1674_v29  ;;  %1613 = vmatprep.subr.bf16.mxu0 %v1612_v30  ;;  %v928_v29 = vld [vmem:[%s3476_s2 + $0x590] sm:$0xff]  ;;  %v1696_v30 = vpack.c.bf16 %v937_v1, %v929_v22  ;;  %v1634_v36 = vpack.c.bf16 %v934_v28, %v926_v27  ;;  %v765_v22 = vld [vmem:[%s3476_s2 + $0x78] sm:$0xff] }
 0x136   :  { %1677 = vmatprep.subr.bf16.mxu1 %v1676_v34  ;;  %v945_v34 = vld [vmem:[%s3476_s2 + $0x618] sm:$0xff]  ;;  %v1698_v37 = vpack.c.bf16 %v936_v31, %v928_v29  ;;  %v1780_v1 = vpack.c.bf16 %v765_v22, %v757_v23  ;;  %v804_v22 = vld [vmem:[%s3476_s2 + $0x1b0] sm:$0xff] }
 0x138   :  { %1615 = vmatpush1.bf16.msra.mxu0 %v1614_v40  ;;  %v950_v40 = vld [vmem:[%s3476_s2 + $0x640] sm:$0xff] }
 0x139   :  { %1679 = vmatpush1.bf16.msra.mxu1 %v1678_v41  ;;  %1617 = vmatprep.subr.bf16.mxu0 %v1616_v42  ;;  %v944_v41 = vld [vmem:[%s3476_s2 + $0x610] sm:$0xff]  ;;  %v1700_v42 = vpack.c.bf16 %v953_v35, %v945_v34  ;;  %v1638_v48 = vpack.c.bf16 %v950_v40, %v942_v39  ;;  %v1006_v35 = vld [vmem:[%s3477_s3] sm:$0xf] }
 0x13a   :  { %1681 = vmatprep.subr.bf16.mxu1 %v1680_v46  ;;  %v961_v46 = vld [vmem:[%s3476_s2 + $0x698] sm:$0xff]  ;;  %v1702_v49 = vpack.c.bf16 %v952_v43, %v944_v41  ;;  %1009 = vperm.xlu0 %1846, %v1006_v35   ;;  %v762_v43 = vld [vmem:[%s3476_s2 + $0x60] sm:$0xff]  ;;  %v828_v35 = vld [vmem:[%s3476_s2 + $0x270] sm:$0xff] }
 0x13c   :  { %1619 = vmatpush1.bf16.msra.mxu0 %v1618_v52  ;;  %v966_v52 = vld [vmem:[%s3476_s2 + $0x6c0] sm:$0xff] }
 0x13d   :  { %1683 = vmatpush1.bf16.msra.mxu1 %v1682_v53  ;;  %1621 = vmatprep.subr.bf16.mxu0 %v1620_v54  ;;  %v960_v53 = vld [vmem:[%s3476_s2 + $0x690] sm:$0xff]  ;;  %v1704_v54 = vpack.c.bf16 %v969_v47, %v961_v46  ;;  %v1642_v60 = vpack.c.bf16 %v966_v52, %v958_v51  ;;  %v781_v51 = vld [vmem:[%s3476_s2 + $0xf8] sm:$0xff] }
 0x13e   :  { %1685 = vmatprep.subr.bf16.mxu1 %v1684_v58  ;;  %v977_v58 = vld [vmem:[%s3476_s2 + $0x718] sm:$0xff]  ;;  %v1706_v61 = vpack.c.bf16 %v968_v55, %v960_v53 }
 0x140   :  { %1623 = vmatpush1.bf16.msra.mxu0 %v1622_v0  ;;  %v982_v0 = vld [vmem:[%s3476_s2 + $0x740] sm:$0xff] }
 0x141   :  { %1687 = vmatpush1.bf16.msra.mxu1 %v1686_v2  ;;  %1625 = vmatprep.subr.bf16.mxu0 %v1624_v3  ;;  %v1708_v2 = vpack.c.bf16 %v985_v59, %v977_v58  ;;  %v976_v3 = vld [vmem:[%s3476_s2 + $0x710] sm:$0xff]  ;;  %v1646_v5 = vpack.c.bf16 %v982_v0, %v974_v63  ;;  %v778_v58 = vld [vmem:[%s3476_s2 + $0xe0] sm:$0xff] }
 0x142   :  { %1689 = vmatprep.subr.bf16.mxu1 %v1688_v7  ;;  %v1710_v6 = vpack.c.bf16 %v984_v4, %v976_v3  ;;  %v991_v7 = vld [vmem:[%s3476_s2 + $0x788] sm:$0xff]  ;;  %v789_v3 = vld [vmem:[%s3476_s2 + $0x138] sm:$0xff] }
 0x143   :  { %v1648_v10 = vpack.c.bf16 %v999_v8, %v991_v7  ;;  %v797_v4 = vld [vmem:[%s3476_s2 + $0x178] sm:$0xff]  ;;  %v786_v7 = vld [vmem:[%s3476_s2 + $0x120] sm:$0xff] }
 0x144   :  { %1627 = vmatpush1.bf16.msra.mxu0 %v1626_v13  ;;  %v998_v13 = vld [vmem:[%s3476_s2 + $0x7c0] sm:$0xff] }
 0x145   :  { %1691 = vmatpush1.bf16.msra.mxu1 %v1690_v14  ;;  %1629 = vmatprep.subr.bf16.mxu0 %v1628_v15  ;;  %v1712_v14 = vpack.c.bf16 %v1001_v11, %v993_v9  ;;  %v1650_v15 = vpack.c.bf16 %v998_v13, %v990_v12  ;;  %v794_v8 = vld [vmem:[%s3476_s2 + $0x160] sm:$0xff]  ;;  %v788_v11 = vld [vmem:[%s3476_s2 + $0x130] sm:$0xff]  ;;  %v803_v13 = vld [vmem:[%s3476_s2 + $0x1a8] sm:$0xff] }
 0x146   :  { %1693 = vmatprep.subr.bf16.mxu1 %v1692_v19  ;;  %v755_v19 = vld [vmem:[%s3476_s2 + $0x28] sm:$0xff]  ;;  %v796_v12 = vld [vmem:[%s3476_s2 + $0x170] sm:$0xff]  ;;  %v1726_v17 = vpack.c.bf16 %v794_v8, %v786_v7 }
 0x147   :  { %v1716_v21 = vpack.c.bf16 %v763_v20, %v755_v19  ;;  %v802_v19 = vld [vmem:[%s3476_s2 + $0x1a0] sm:$0xff]  ;;  %v868_v8 = vld [vmem:[%s3476_s2 + $0x3b0] sm:$0xff] }
 0x148   :  { %1631 = vmatpush1.bf16.msra.mxu0 %v1630_v24  ;;  %v361_v24 = vpop.permute.xlu0 %360  ;;  %v810_v20 = vld [vmem:[%s3476_s2 + $0x1e0] sm:$0xff] }
 0x149   :  { %1695 = vmatpush1.bf16.msra.mxu1 %v1694_v25  ;;  %1633 = vmatprep.subr.bf16.mxu0 %v1632_v26 }
 0x14a   :  { %1697 = vmatprep.subr.bf16.mxu1 %v1696_v30 }
 0x14c   :  { %1635 = vmatpush1.bf16.msra.mxu0 %v1634_v36 }
 0x14d   :  { %1699 = vmatpush1.bf16.msra.mxu1 %v1698_v37  ;;  %1637 = vmatprep.subr.bf16.mxu0 %v1636_v38  ;;  %v754_v38 = vld [vmem:[%s3476_s2 + $0x20] sm:$0xff] }
 0x14e   :  { %1701 = vmatprep.subr.bf16.mxu1 %v1700_v42  ;;  %v1718_v55 = vpack.c.bf16 %v762_v43, %v754_v38  ;;  %v837_v38 = vld [vmem:[%s3476_s2 + $0x2b8] sm:$0xff]  ;;  %v842_v43 = vld [vmem:[%s3476_s2 + $0x2e0] sm:$0xff] }
 0x150   :  { %1639 = vmatpush1.bf16.msra.mxu0 %v1638_v48  ;;  %v771_v48 = vld [vmem:[%s3476_s2 + $0xa8] sm:$0xff] }
 0x151   :  { %1703 = vmatpush1.bf16.msra.mxu1 %v1702_v49  ;;  %1641 = vmatprep.subr.bf16.mxu0 %v1640_v50  ;;  %v779_v49 = vld [vmem:[%s3476_s2 + $0xe8] sm:$0xff]  ;;  %v773_v50 = vld [vmem:[%s3476_s2 + $0xb8] sm:$0xff] }
 0x152   :  { %1705 = vmatprep.subr.bf16.mxu1 %v1704_v54  ;;  %v1720_v63 = vpack.c.bf16 %v779_v49, %v771_v48  ;;  %v1784_v0 = vpack.c.bf16 %v781_v51, %v773_v50  ;;  %v851_v48 = vld [vmem:[%s3476_s2 + $0x328] sm:$0xff]  ;;  %v853_v50 = vld [vmem:[%s3476_s2 + $0x338] sm:$0xff] }
 0x153   :  { %v859_v49 = vld [vmem:[%s3476_s2 + $0x368] sm:$0xff]  ;;  %v861_v51 = vld [vmem:[%s3476_s2 + $0x378] sm:$0xff] }
 0x154   :  { %1643 = vmatpush1.bf16.msra.mxu0 %v1642_v60  ;;  %v772_v60 = vld [vmem:[%s3476_s2 + $0xb0] sm:$0xff] }
 0x155   :  { %1707 = vmatpush1.bf16.msra.mxu1 %v1706_v61  ;;  %1645 = vmatprep.subr.bf16.mxu0 %v1644_v62  ;;  %v780_v61 = vld [vmem:[%s3476_s2 + $0xf0] sm:$0xff]  ;;  %v787_v62 = vld [vmem:[%s3476_s2 + $0x128] sm:$0xff] }
 0x156   :  { %1709 = vmatprep.subr.bf16.mxu1 %v1708_v2  ;;  %v795_v2 = vld [vmem:[%s3476_s2 + $0x168] sm:$0xff] }
 0x157   :  { %v1724_v9 = vpack.c.bf16 %v795_v2, %v787_v62  ;;  %v875_v62 = vld [vmem:[%s3476_s2 + $0x3e8] sm:$0xff] }
 0x158   :  { %1647 = vmatpush1.bf16.msra.mxu0 %v1646_v5  ;;  %v1722_v5 = vpack.c.bf16 %v778_v58, %v770_v57  ;;  %v1740_v57 = vpack.c.bf16 %v859_v49, %v851_v48  ;;  %v1804_v58 = vpack.c.bf16 %v861_v51, %v853_v50  ;;  %v941_v48 = vld [vmem:[%s3476_s2 + $0x5f8] sm:$0xff]  ;;  %v930_v51 = vld [vmem:[%s3476_s2 + $0x5a0] sm:$0xff] }
 0x159   :  { %1711 = vmatpush1.bf16.msra.mxu1 %v1710_v6  ;;  %1649 = vmatprep.subr.bf16.mxu0 %v1648_v10  ;;  %v1786_v6 = vpack.c.bf16 %v780_v61, %v772_v60  ;;  %v1788_v10 = vpack.c.bf16 %v797_v4, %v789_v3  ;;  %v860_v60 = vld [vmem:[%s3476_s2 + $0x370] sm:$0xff]  ;;  %v867_v61 = vld [vmem:[%s3476_s2 + $0x3a8] sm:$0xff]  ;;  %v866_v4 = vld [vmem:[%s3476_s2 + $0x3a0] sm:$0xff] }
 0x15a   :  { %1713 = vmatprep.subr.bf16.mxu1 %v1712_v14  ;;  %v811_v14 = vld [vmem:[%s3476_s2 + $0x1e8] sm:$0xff] }
 0x15b   :  { %v1728_v23 = vpack.c.bf16 %v811_v14, %v803_v13  ;;  %v893_v13 = vld [vmem:[%s3476_s2 + $0x478] sm:$0xff] }
 0x15c   :  { %1651 = vmatpush1.bf16.msra.mxu0 %v1650_v15  ;;  %v805_v15 = vld [vmem:[%s3476_s2 + $0x1b8] sm:$0xff] }
 0x15d   :  { %1715 = vmatpush1.bf16.msra.mxu1 %v1714_v18  ;;  %1717 = vmatprep.subr.bf16.mxu0 %v1716_v21  ;;  %v1790_v18 = vpack.c.bf16 %v796_v12, %v788_v11  ;;  %v1792_v21 = vpack.c.bf16 %v813_v16, %v805_v15  ;;  %v891_v11 = vld [vmem:[%s3476_s2 + $0x468] sm:$0xff]  ;;  %v885_v12 = vld [vmem:[%s3476_s2 + $0x438] sm:$0xff]  ;;  %v882_v16 = vld [vmem:[%s3476_s2 + $0x420] sm:$0xff] }
 0x15e   :  { %1781 = vmatprep.subr.bf16.mxu1 %v1780_v1  ;;  %v812_v1 = vld [vmem:[%s3476_s2 + $0x1f0] sm:$0xff] }
 0x1af   :  { %v429_v25 = vpop.f32.mrb[0].mxu1  ;;  %v500_v26 = vpop.f32.mrb[2].mxu0 }
 0x1b0   :  { %v430_v27 = vadd.f32 %v429_v25, %v361_v24  ;;  %v501_v28 = vadd.f32 %v500_v26, %v361_v24  ;;  %v431_v29 = vpop.f32.mrb[1].mxu1  ;;  %v502_v30 = vpop.f32.mrb[3].mxu0  ;;  %v827_v25 = vld [vmem:[%s3476_s2 + $0x268] sm:$0xff]  ;;  %v821_v26 = vld [vmem:[%s3476_s2 + $0x238] sm:$0xff] }
 0x1b1   :  { %v432_v31 = vadd.f32 %v431_v29, %v361_v24  ;;  %v503_v32 = vadd.f32 %v502_v30, %v361_v24  ;;  %v1794_v29 = vpack.c.bf16 %v812_v1, %v804_v22  ;;  %v818_v30 = vld [vmem:[%s3476_s2 + $0x220] sm:$0xff]  ;;  %v907_v22 = vld [vmem:[%s3476_s2 + $0x4e8] sm:$0xff]  ;;  %v901_v1 = vld [vmem:[%s3476_s2 + $0x4b8] sm:$0xff] }
 0x1b3   :  { %v655_v33 = vcombine.low %v430_v27, %v432_v31  ;;  %v656_v34 = vcombine.low %v501_v28, %v503_v32  ;;  %v829_v27 = vld [vmem:[%s3476_s2 + $0x278] sm:$0xff]  ;;  %v1730_v28 = vpack.c.bf16 %v810_v20, %v802_v19  ;;  %v826_v31 = vld [vmem:[%s3476_s2 + $0x260] sm:$0xff]  ;;  %v1812_v19 = vpack.c.bf16 %v893_v13, %v885_v12  ;;  %v884_v20 = vld [vmem:[%s3476_s2 + $0x430] sm:$0xff] }
 0x1b4   :  { %v962_v13 = vld [vmem:[%s3476_s2 + $0x6a0] sm:$0xff] }
 0x1b5   :  { %663 = vst [vmem:[%s3478_s4] sm:$0xff] %v655_v33  ;;  %664 = vst [vmem:[%s3478_s4 + $0x8] sm:$0xff] %v656_v34  ;;  %v1796_v33 = vpack.c.bf16 %v829_v27, %v821_v26  ;;  %v820_v34 = vld [vmem:[%s3476_s2 + $0x230] sm:$0xff]  ;;  %v898_v27 = vld [vmem:[%s3476_s2 + $0x4a0] sm:$0xff] }
 0x1ef   :  { %v571_v36 = vpop.f32.mrb[2].mxu1  ;;  %v642_v37 = vpop.f32.mrb[4].mxu0 }
 0x1f0   :  { %v572_v39 = vadd.f32 %v571_v36, %v361_v24  ;;  %v643_v40 = vadd.f32 %v642_v37, %v361_v24  ;;  %v573_v41 = vpop.f32.mrb[3].mxu1  ;;  %v644_v42 = vpop.f32.mrb[5].mxu0  ;;  %v835_v36 = vld [vmem:[%s3476_s2 + $0x2a8] sm:$0xff] }
 0x1f1   :  { %v574_v46 = vadd.f32 %v573_v41, %v361_v24  ;;  %v645_v47 = vadd.f32 %v644_v42, %v361_v24  ;;  %v819_v24 = vld [vmem:[%s3476_s2 + $0x228] sm:$0xff]  ;;  %v1798_v41 = vpack.c.bf16 %v828_v35, %v820_v34  ;;  %v834_v42 = vld [vmem:[%s3476_s2 + $0x2a0] sm:$0xff]  ;;  %v917_v35 = vld [vmem:[%s3476_s2 + $0x538] sm:$0xff] }
 0x1f2   :  { %v1732_v32 = vpack.c.bf16 %v827_v25, %v819_v24  ;;  %v843_v37 = vld [vmem:[%s3476_s2 + $0x2e8] sm:$0xff]  ;;  %v909_v24 = vld [vmem:[%s3476_s2 + $0x4f8] sm:$0xff] }
 0x1f3   :  { %v657_v52 = vcombine.low %v572_v39, %v574_v46  ;;  %v658_v53 = vcombine.low %v643_v40, %v645_v47  ;;  %v3102_v54 = vpop.f32.mrb[4].mxu1  ;;  %v845_v39 = vld [vmem:[%s3476_s2 + $0x2f8] sm:$0xff]  ;;  %v1734_v40 = vpack.c.bf16 %v826_v31, %v818_v30  ;;  %v1736_v44 = vpack.c.bf16 %v843_v37, %v835_v36  ;;  %v836_v46 = vld [vmem:[%s3476_s2 + $0x2b0] sm:$0xff]  ;;  %v923_v34 = vld [vmem:[%s3476_s2 + $0x568] sm:$0xff] }
 0x1f4   :  { %v747_v59 = vpop.f32.mrb[5].mxu1  ;;  %v1800_v45 = vpack.c.bf16 %v845_v39, %v837_v38  ;;  %v844_v47 = vld [vmem:[%s3476_s2 + $0x2f0] sm:$0xff]  ;;  %v1816_v30 = vpack.c.bf16 %v909_v24, %v901_v1  ;;  %v925_v36 = vld [vmem:[%s3476_s2 + $0x578] sm:$0xff]  ;;  %v914_v39 = vld [vmem:[%s3476_s2 + $0x520] sm:$0xff] }
 0x1f5   :  { %665 = vst [vmem:[%s3478_s4 + $0x10] sm:$0xff] %v657_v52  ;;  %666 = vst [vmem:[%s3478_s4 + $0x18] sm:$0xff] %v658_v53  ;;  %1076 = vmatprep.mubr.f32.mxu0 %v747_v59  ;;  %1147 = vmatprep.mubr.f32.mxu1 %v747_v59  ;;  %v1738_v52 = vpack.c.bf16 %v842_v43, %v834_v42  ;;  %v1802_v53 = vpack.c.bf16 %v844_v47, %v836_v46  ;;  %v900_v31 = vld [vmem:[%s3476_s2 + $0x4b0] sm:$0xff]  ;;  %v939_v46 = vld [vmem:[%s3476_s2 + $0x5e8] sm:$0xff] }
 0x1f6   :  { %1077 = vmatmul.mubr.f32.vlgmr.msra.gmra.mrb[6].mxu0 %v3102_v54  ;;  %1148 = vmatmul.mubr.f32.vlgmr.msra.gmra.mrb[6].mxu1 %v3102_v54  ;;  %v1820_v42 = vpack.c.bf16 %v925_v36, %v917_v35  ;;  %v916_v43 = vld [vmem:[%s3476_s2 + $0x530] sm:$0xff]  ;;  %v933_v47 = vld [vmem:[%s3476_s2 + $0x5b8] sm:$0xff]  ;;  %v978_v24 = vld [vmem:[%s3476_s2 + $0x720] sm:$0xff] }
 0x1f7   :  { %1719 = vmatpush1.bf16.msra.mxu0 %v1718_v55  ;;  %1783 = vmatpush1.bf16.msra.mxu1 %v1782_v56  ;;  %v850_v55 = vld [vmem:[%s3476_s2 + $0x320] sm:$0xff] }
 0x1f8   :  { %1218 = vmatprep.mubr.f32.mxu0 %v747_v59  ;;  %1289 = vmatprep.mubr.f32.mxu1 %v747_v59  ;;  %v858_v56 = vld [vmem:[%s3476_s2 + $0x360] sm:$0xff]  ;;  %v852_v59 = vld [vmem:[%s3476_s2 + $0x330] sm:$0xff] }
 0x1f9   :  { %1721 = vmatprep.subr.bf16.mxu0 %v1720_v63  ;;  %1785 = vmatprep.subr.bf16.mxu1 %v1784_v0  ;;  %v869_v63 = vld [vmem:[%s3476_s2 + $0x3b8] sm:$0xff]  ;;  %v1742_v2 = vpack.c.bf16 %v858_v56, %v850_v55  ;;  %v1806_v3 = vpack.c.bf16 %v860_v60, %v852_v59  ;;  %v1824_v55 = vpack.c.bf16 %v941_v48, %v933_v47  ;;  %v932_v56 = vld [vmem:[%s3476_s2 + $0x5b0] sm:$0xff]  ;;  %v955_v59 = vld [vmem:[%s3476_s2 + $0x668] sm:$0xff] }
 0x1fa   :  { %v877_v0 = vld [vmem:[%s3476_s2 + $0x3f8] sm:$0xff]  ;;  %v994_v36 = vld [vmem:[%s3476_s2 + $0x7a0] sm:$0xff] }
 0x1fb   :  { %1723 = vmatpush1.bf16.msra.mxu0 %v1722_v5  ;;  %1787 = vmatpush1.bf16.msra.mxu1 %v1786_v6  ;;  %v874_v5 = vld [vmem:[%s3476_s2 + $0x3e0] sm:$0xff]  ;;  %v1744_v6 = vpack.c.bf16 %v875_v62, %v867_v61  ;;  %v1808_v7 = vpack.c.bf16 %v877_v0, %v869_v63  ;;  %v949_v60 = vld [vmem:[%s3476_s2 + $0x638] sm:$0xff] }
 0x1fc   :  { %1725 = vmatprep.subr.bf16.mxu0 %v1724_v9  ;;  %1789 = vmatprep.subr.bf16.mxu1 %v1788_v10  ;;  %v876_v9 = vld [vmem:[%s3476_s2 + $0x3f0] sm:$0xff]  ;;  %v883_v10 = vld [vmem:[%s3476_s2 + $0x428] sm:$0xff]  ;;  %v1746_v14 = vpack.c.bf16 %v874_v5, %v866_v4  ;;  %v957_v61 = vld [vmem:[%s3476_s2 + $0x678] sm:$0xff] }
 0x1fd   :  { %v1810_v15 = vpack.c.bf16 %v876_v9, %v868_v8  ;;  %v946_v0 = vld [vmem:[%s3476_s2 + $0x620] sm:$0xff]  ;;  %v1828_v4 = vpack.c.bf16 %v957_v61, %v949_v60  ;;  %v948_v5 = vld [vmem:[%s3476_s2 + $0x630] sm:$0xff]  ;;  %v971_v8 = vld [vmem:[%s3476_s2 + $0x6e8] sm:$0xff] }
 0x1fe   :  { %v965_v9 = vld [vmem:[%s3476_s2 + $0x6b8] sm:$0xff] }
 0x1ff   :  { %1727 = vmatpush1.bf16.msra.mxu0 %v1726_v17  ;;  %1791 = vmatpush1.bf16.msra.mxu1 %v1790_v18  ;;  %v890_v17 = vld [vmem:[%s3476_s2 + $0x460] sm:$0xff]  ;;  %v1748_v18 = vpack.c.bf16 %v891_v11, %v883_v10  ;;  %v973_v10 = vld [vmem:[%s3476_s2 + $0x6f8] sm:$0xff] }
 0x200   :  { %1729 = vmatprep.subr.bf16.mxu0 %v1728_v23  ;;  %1793 = vmatprep.subr.bf16.mxu1 %v1792_v21  ;;  %v892_v23 = vld [vmem:[%s3476_s2 + $0x470] sm:$0xff]  ;;  %v899_v21 = vld [vmem:[%s3476_s2 + $0x4a8] sm:$0xff]  ;;  %v1750_v25 = vpack.c.bf16 %v890_v17, %v882_v16  ;;  %v1832_v16 = vpack.c.bf16 %v973_v10, %v965_v9 }
 0x201   :  { %v1814_v26 = vpack.c.bf16 %v892_v23, %v884_v20  ;;  %v964_v17 = vld [vmem:[%s3476_s2 + $0x6b0] sm:$0xff]  ;;  %v987_v20 = vld [vmem:[%s3476_s2 + $0x768] sm:$0xff]  ;;  %v981_v23 = vld [vmem:[%s3476_s2 + $0x738] sm:$0xff] }
 0x203   :  { %1731 = vmatpush1.bf16.msra.mxu0 %v1730_v28  ;;  %1795 = vmatpush1.bf16.msra.mxu1 %v1794_v29  ;;  %v906_v28 = vld [vmem:[%s3476_s2 + $0x4e0] sm:$0xff]  ;;  %v1752_v29 = vpack.c.bf16 %v907_v22, %v899_v21  ;;  %v989_v21 = vld [vmem:[%s3476_s2 + $0x778] sm:$0xff] }
 0x204   :  { %1733 = vmatprep.subr.bf16.mxu0 %v1732_v32  ;;  %1797 = vmatprep.subr.bf16.mxu1 %v1796_v33  ;;  %v908_v32 = vld [vmem:[%s3476_s2 + $0x4f0] sm:$0xff]  ;;  %v915_v33 = vld [vmem:[%s3476_s2 + $0x528] sm:$0xff]  ;;  %v1754_v37 = vpack.c.bf16 %v906_v28, %v898_v27  ;;  %v1836_v27 = vpack.c.bf16 %v989_v21, %v981_v23 }
 0x205   :  { %v1818_v38 = vpack.c.bf16 %v908_v32, %v900_v31  ;;  %v980_v28 = vld [vmem:[%s3476_s2 + $0x730] sm:$0xff]  ;;  %v1003_v31 = vld [vmem:[%s3476_s2 + $0x7e8] sm:$0xff]  ;;  %v997_v32 = vld [vmem:[%s3476_s2 + $0x7b8] sm:$0xff] }
 0x207   :  { %1735 = vmatpush1.bf16.msra.mxu0 %v1734_v40  ;;  %1799 = vmatpush1.bf16.msra.mxu1 %v1798_v41  ;;  %v922_v40 = vld [vmem:[%s3476_s2 + $0x560] sm:$0xff]  ;;  %v1756_v41 = vpack.c.bf16 %v923_v34, %v915_v33  ;;  %v1005_v33 = vld [vmem:[%s3476_s2 + $0x7f8] sm:$0xff] }
 0x208   :  { %1737 = vmatprep.subr.bf16.mxu0 %v1736_v44  ;;  %1801 = vmatprep.subr.bf16.mxu1 %v1800_v45  ;;  %v924_v44 = vld [vmem:[%s3476_s2 + $0x570] sm:$0xff]  ;;  %v931_v45 = vld [vmem:[%s3476_s2 + $0x5a8] sm:$0xff]  ;;  %v1758_v49 = vpack.c.bf16 %v922_v40, %v914_v39  ;;  %v1002_v39 = vld [vmem:[%s3476_s2 + $0x7e0] sm:$0xff] }
 0x209   :  { %v1822_v50 = vpack.c.bf16 %v924_v44, %v916_v43  ;;  %v996_v40 = vld [vmem:[%s3476_s2 + $0x7b0] sm:$0xff]  ;;  %v1010_v44 = vpop.permute.xlu0 %1009 }
 0x20b   :  { %1739 = vmatpush1.bf16.msra.mxu0 %v1738_v52  ;;  %1803 = vmatpush1.bf16.msra.mxu1 %v1802_v53  ;;  %v938_v52 = vld [vmem:[%s3476_s2 + $0x5e0] sm:$0xff]  ;;  %v1760_v53 = vpack.c.bf16 %v939_v46, %v931_v45 }
 0x20c   :  { %1741 = vmatprep.subr.bf16.mxu0 %v1740_v57  ;;  %1805 = vmatprep.subr.bf16.mxu1 %v1804_v58  ;;  %v940_v57 = vld [vmem:[%s3476_s2 + $0x5f0] sm:$0xff]  ;;  %v947_v58 = vld [vmem:[%s3476_s2 + $0x628] sm:$0xff]  ;;  %v1762_v62 = vpack.c.bf16 %v938_v52, %v930_v51 }
 0x20d   :  { %v1826_v63 = vpack.c.bf16 %v940_v57, %v932_v56 }
 0x20f   :  { %1743 = vmatpush1.bf16.msra.mxu0 %v1742_v2  ;;  %1807 = vmatpush1.bf16.msra.mxu1 %v1806_v3  ;;  %v954_v2 = vld [vmem:[%s3476_s2 + $0x660] sm:$0xff]  ;;  %v1764_v3 = vpack.c.bf16 %v955_v59, %v947_v58 }
 0x210   :  { %1745 = vmatprep.subr.bf16.mxu0 %v1744_v6  ;;  %1809 = vmatprep.subr.bf16.mxu1 %v1808_v7  ;;  %v956_v6 = vld [vmem:[%s3476_s2 + $0x670] sm:$0xff]  ;;  %v963_v7 = vld [vmem:[%s3476_s2 + $0x6a8] sm:$0xff]  ;;  %v1766_v11 = vpack.c.bf16 %v954_v2, %v946_v0 }
 0x211   :  { %v1830_v12 = vpack.c.bf16 %v956_v6, %v948_v5 }
 0x213   :  { %1747 = vmatpush1.bf16.msra.mxu0 %v1746_v14  ;;  %1811 = vmatpush1.bf16.msra.mxu1 %v1810_v15  ;;  %v970_v14 = vld [vmem:[%s3476_s2 + $0x6e0] sm:$0xff]  ;;  %v1768_v15 = vpack.c.bf16 %v971_v8, %v963_v7 }
 0x214   :  { %1749 = vmatprep.subr.bf16.mxu0 %v1748_v18  ;;  %1813 = vmatprep.subr.bf16.mxu1 %v1812_v19  ;;  %v972_v18 = vld [vmem:[%s3476_s2 + $0x6f0] sm:$0xff]  ;;  %v979_v19 = vld [vmem:[%s3476_s2 + $0x728] sm:$0xff]  ;;  %v1770_v22 = vpack.c.bf16 %v970_v14, %v962_v13 }
 0x215   :  { %v1834_v1 = vpack.c.bf16 %v972_v18, %v964_v17 }
 0x217   :  { %1751 = vmatpush1.bf16.msra.mxu0 %v1750_v25  ;;  %1815 = vmatpush1.bf16.msra.mxu1 %v1814_v26  ;;  %v986_v25 = vld [vmem:[%s3476_s2 + $0x760] sm:$0xff]  ;;  %v1772_v26 = vpack.c.bf16 %v987_v20, %v979_v19 }
 0x218   :  { %1753 = vmatprep.subr.bf16.mxu0 %v1752_v29  ;;  %1817 = vmatprep.subr.bf16.mxu1 %v1816_v30  ;;  %v988_v29 = vld [vmem:[%s3476_s2 + $0x770] sm:$0xff]  ;;  %v995_v30 = vld [vmem:[%s3476_s2 + $0x7a8] sm:$0xff]  ;;  %v1774_v34 = vpack.c.bf16 %v986_v25, %v978_v24 }
 0x219   :  { %v1838_v35 = vpack.c.bf16 %v988_v29, %v980_v28 }
 0x21b   :  { %1755 = vmatpush1.bf16.msra.mxu0 %v1754_v37  ;;  %1819 = vmatpush1.bf16.msra.mxu1 %v1818_v38  ;;  %v1776_v37 = vpack.c.bf16 %v1003_v31, %v995_v30  ;;  %v1840_v38 = vpack.c.bf16 %v1005_v33, %v997_v32 }
 0x21c   :  { %1757 = vmatprep.subr.bf16.mxu0 %v1756_v41  ;;  %1821 = vmatprep.subr.bf16.mxu1 %v1820_v42  ;;  %v1004_v41 = vld [vmem:[%s3476_s2 + $0x7f0] sm:$0xff]  ;;  %v1778_v42 = vpack.c.bf16 %v1002_v39, %v994_v36 }
 0x21d   :  { %v1842_v43 = vpack.c.bf16 %v1004_v41, %v996_v40 }
 0x21f   :  { %1759 = vmatpush1.bf16.msra.mxu0 %v1758_v49  ;;  %1823 = vmatpush1.bf16.msra.mxu1 %v1822_v50 }
 0x220   :  { %1761 = vmatprep.subr.bf16.mxu0 %v1760_v53  ;;  %1825 = vmatprep.subr.bf16.mxu1 %v1824_v55 }
 0x223   :  { %1763 = vmatpush1.bf16.msra.mxu0 %v1762_v62  ;;  %1827 = vmatpush1.bf16.msra.mxu1 %v1826_v63 }
 0x224   :  { %1765 = vmatprep.subr.bf16.mxu0 %v1764_v3  ;;  %1829 = vmatprep.subr.bf16.mxu1 %v1828_v4 }
 0x227   :  { %1767 = vmatpush1.bf16.msra.mxu0 %v1766_v11  ;;  %1831 = vmatpush1.bf16.msra.mxu1 %v1830_v12 }
 0x228   :  { %1769 = vmatprep.subr.bf16.mxu0 %v1768_v15  ;;  %1833 = vmatprep.subr.bf16.mxu1 %v1832_v16 }
 0x22b   :  { %1771 = vmatpush1.bf16.msra.mxu0 %v1770_v22  ;;  %1835 = vmatpush1.bf16.msra.mxu1 %v1834_v1 }
 0x22c   :  { %1773 = vmatprep.subr.bf16.mxu0 %v1772_v26  ;;  %1837 = vmatprep.subr.bf16.mxu1 %v1836_v27 }
 0x22f   :  { %1775 = vmatpush1.bf16.msra.mxu0 %v1774_v34  ;;  %1839 = vmatpush1.bf16.msra.mxu1 %v1838_v35 }
 0x230   :  { %1777 = vmatprep.subr.bf16.mxu0 %v1776_v37  ;;  %1841 = vmatprep.subr.bf16.mxu1 %v1840_v38 }
 0x233   :  { %1779 = vmatpush1.bf16.msra.mxu0 %v1778_v42  ;;  %1843 = vmatpush1.bf16.msra.mxu1 %v1842_v43 }
 0x236   :  { %1219 = vmatmul.mubr.f32.vlgmr.msra.gmra.mrb[8].mxu0 %v3102_v54  ;;  %1290 = vmatmul.mubr.f32.vlgmr.msra.gmra.mrb[8].mxu1 %v3102_v54 }
 0x2c9   :  { %v1078_v45 = vpop.f32.mrb[6].mxu0  ;;  %v1149_v46 = vpop.f32.mrb[6].mxu1 }
 0x2ca   :  { %v1079_v47 = vadd.f32 %v1078_v45, %v1010_v44  ;;  %v1150_v48 = vadd.f32 %v1149_v46, %v1010_v44  ;;  %v1080_v49 = vpop.f32.mrb[7].mxu0  ;;  %v1151_v50 = vpop.f32.mrb[7].mxu1 }
 0x2cb   :  { %v1081_v51 = vadd.f32 %v1080_v49, %v1010_v44  ;;  %v1152_v52 = vadd.f32 %v1151_v50, %v1010_v44 }
 0x2cd   :  { %v1304_v53 = vcombine.low %v1079_v47, %v1081_v51  ;;  %v1305_v55 = vcombine.low %v1150_v48, %v1152_v52 }
 0x2cf   :  { %1328 = vst [vmem:[%s3478_s4 + $0x20] sm:$0xff] %v1304_v53  ;;  %1329 = vst [vmem:[%s3478_s4 + $0x28] sm:$0xff] %v1305_v55 }
 0x309   :  { %v1220_v54 = vpop.f32.mrb[8].mxu0  ;;  %v1291_v56 = vpop.f32.mrb[8].mxu1 }
 0x30a   :  { %v1221_v57 = vadd.f32 %v1220_v54, %v1010_v44  ;;  %v1292_v58 = vadd.f32 %v1291_v56, %v1010_v44  ;;  %v1222_v59 = vpop.f32.mrb[9].mxu0  ;;  %v1293_v60 = vpop.f32.mrb[9].mxu1 }
 0x30b   :  { %v1223_v61 = vadd.f32 %v1222_v59, %v1010_v44  ;;  %v1294_v62 = vadd.f32 %v1293_v60, %v1010_v44 }
 0x30d   :  { %v1306_v63 = vcombine.low %v1221_v57, %v1223_v61  ;;  %v1307_v0 = vcombine.low %v1292_v58, %v1294_v62 }
 0x30f   :  { %1330 = vst [vmem:[%s3478_s4 + $0x30] sm:$0xff] %v1306_v63  ;;  %1331 = vst [vmem:[%s3478_s4 + $0x38] sm:$0xff] %v1307_v0 }

</bundles_post_ra>
